<compile_context>
chip_gen: v7x
topology: tpu7x:2x2x1
jax: 0.10.0
libtpu: 0.0.40
codegen_flags: <defaults>
</compile_context>

<pallas_src>
import jax
import jax.numpy as jnp
import numpy as np
from jax import lax
from jax.experimental import pallas as pl
from jax.experimental.pallas import tpu as pltpu

EPSILON = 0.1
ITERATIONS = 100
THRESHOLD = 0.1
CHUNK = 2              # Sinkhorn updates per while_loop step (scalar-sync amortisation)
_NEG_BIG = -1e30       # finite log-kernel fill for padded rows/cols: exp(-1e30 + x) == 0.0
_TINY = 1e-37          # floor for the fast-path sums; only ever binds on padded lines

_MM_DN = (((1,), (0,)), ((), ()))     # (a,k)@(k,b): plain matmul
_DOT_T_DN = (((1,), (1,)), ((), ()))  # contract last dims: A @ B^T


def _round_up(v, m):
    return (v + m - 1) // m * m


def _make_sinkhorn_kernel(num_rows, num_cols, first_is_rows, epsilon, iterations, threshold):
    """Kernel over a [rows, cols] layout.  `first_is_rows` selects which marginal is updated
    first each iteration (torch updates the x-marginal first), so the wrapper can transpose the
    storage for lane density without changing the forward semantics."""
    inv_eps = 1.0 / float(epsilon)
    n_first = num_rows if first_is_rows else num_cols      # = number of x points
    n_second = num_cols if first_is_rows else num_rows     # = number of y points
    log_first = float(np.log(1.0 / n_first + 1e-8))
    log_second = float(np.log(1.0 / n_second + 1e-8))

    def kernel(r_ref, c_ref, cost_ref, pi_ref, negc_ref, pr_ref, pc_ref):
        rp = r_ref[...]                     # [rows_pad, d_pad] points on the sublane axis
        cp = c_ref[...]                     # [cols_pad, d_pad] points on the lane axis
        rows_pad, d_pad = rp.shape
        cols_pad = cp.shape[0]

        ones_c1 = jnp.ones((cols_pad, 1), jnp.float32)
        ones_1r = jnp.ones((1, rows_pad), jnp.float32)

        # ---- one-time ground cost on the MXU:  C[i,j] = |r_i|^2 + |c_j|^2 - 2 <r_i, c_j>
        rc = lax.dot_general(rp, cp, _DOT_T_DN, preferred_element_type=jnp.float32)
        r_sq = jnp.sum(rp * rp, axis=-1, keepdims=True)                       # [rows_pad, 1]
        c_sq = lax.dot_general(jnp.ones((1, d_pad), jnp.float32), cp * cp, _DOT_T_DN,
                               preferred_element_type=jnp.float32)            # [1, cols_pad]
        cost_mat = r_sq + c_sq - 2.0 * rc

        row_valid = lax.broadcasted_iota(jnp.int32, (rows_pad, 1), 0) < num_rows
        col_valid = lax.broadcasted_iota(jnp.int32, (1, cols_pad), 1) < num_cols
        valid = jnp.logical_and(row_valid, col_valid)

        # Hoisted -C/eps; padded entries pushed to a finite -1e30 so exp() underflows to 0.
        negc_ref[...] = jnp.where(valid, -cost_mat * inv_eps, _NEG_BIG)

        def row_parts(k):
            """Row max (XLU, unavoidable) + one exp pass + row sums as an MXU matvec."""
            mx = jnp.max(k, axis=-1, keepdims=True)
            p = jnp.exp(k - mx)
            s = lax.dot_general(p, ones_c1, _MM_DN, preferred_element_type=jnp.float32)
            return mx, p, s

        def col_parts(k):
            """Column max (XLU) + one exp pass + column sums as an MXU matvec."""
            mx = jnp.max(k, axis=0, keepdims=True)
            p = jnp.exp(k - mx)
            s = lax.dot_general(ones_1r, p, _MM_DN, preferred_element_type=jnp.float32)
            return mx, p, s

        # ---- iteration 1 (peeled): both LSEs fully max-stabilised.  With eps small w.r.t. the
        # cost scale the raw exp(k2) can underflow along whole lines here, so the single-exp
        # fast path below is only safe from iteration 2 on (see invariant at the loop).
        negc = negc_ref[...]
        if first_is_rows:
            mx1, _p1, s1 = row_parts(negc)
            pr1 = jnp.where(row_valid, log_first - (mx1 + jnp.log(s1)), 0.0)
            k2 = negc + pr1
            mx2 = jnp.max(k2, axis=0, keepdims=True)
            lse2 = mx2 + jnp.log(jnp.sum(jnp.exp(k2 - mx2), axis=0, keepdims=True))
            pc1 = jnp.where(col_valid, log_second - lse2, 0.0)
        else:
            mx1, _p1, s1 = col_parts(negc)
            pc1 = jnp.where(col_valid, log_first - (mx1 + jnp.log(s1)), 0.0)
            k2 = negc + pc1
            mx2 = jnp.max(k2, axis=-1, keepdims=True)
            lse2 = mx2 + jnp.log(jnp.sum(jnp.exp(k2 - mx2), axis=-1, keepdims=True))
            pr1 = jnp.where(row_valid, log_second - lse2, 0.0)
        diff1 = epsilon * (jnp.sum(jnp.abs(pr1)) + jnp.sum(jnp.abs(pc1)))
        pr_ref[...] = pr1
        pc_ref[...] = pc1

        # ---- iterations 2..T: ONE [rows, cols] exp pass per iteration.
        # Invariant: after every second-marginal update the second-axis LSE of the next k1
        # equals log_second, hence sum(exp(k1)) ~= 1 and, after the first-marginal update,
        # every line sum of exp(k2) is >= (1/n_first)*(1/n_second): log() needs no max.
        def cond(carry):
            it, diff = carry
            return jnp.logical_and(it < iterations, diff >= threshold)

        def body(carry):
            it, diff = carry
            negc = negc_ref[...]
            for _ in range(CHUNK):
                pr = pr_ref[...]
                pc = pc_ref[...]
                active = jnp.logical_and(diff >= threshold, it < iterations)
                k1 = negc + pr + pc
                if first_is_rows:
                    mx, p, s1 = row_parts(k1)
                    pr_new = jnp.where(row_valid, log_first - (mx + jnp.log(s1)) + pr, 0.0)
                    # exp(k2) == p * r; r == 0 on padded rows (mx == -1e30 there).
                    r = jnp.exp(pr_new - pr + mx)
                    w = p * r
                    s2 = lax.dot_general(ones_1r, w, _MM_DN,
                                         preferred_element_type=jnp.float32)   # column sums
                    pc_new = jnp.where(
                        col_valid, log_second - jnp.log(jnp.maximum(s2, _TINY)) + pc, 0.0)
                else:
                    mx, p, s1 = col_parts(k1)
                    pc_new = jnp.where(col_valid, log_first - (mx + jnp.log(s1)) + pc, 0.0)
                    r = jnp.exp(pc_new - pc + mx)        # 0 on padded columns
                    w = p * r
                    s2 = lax.dot_general(w, ones_c1, _MM_DN,
                                         preferred_element_type=jnp.float32)   # row sums
                    pr_new = jnp.where(
                        row_valid, log_second - jnp.log(jnp.maximum(s2, _TINY)) + pr, 0.0)
                step_diff = epsilon * (jnp.sum(jnp.abs(pr_new - pr)) +
                                       jnp.sum(jnp.abs(pc_new - pc)))
                # Freeze-select: exact torch per-iteration early-exit semantics, but the scalar
                # convergence check only gates the while_loop once per CHUNK iterations.
                pr_ref[...] = jnp.where(active, pr_new, pr)
                pc_ref[...] = jnp.where(active, pc_new, pc)
                diff = jnp.where(active, step_diff, diff)
                it = jnp.where(active, it + 1, it)
            return it, diff

        lax.while_loop(cond, body, (jnp.int32(1), diff1))
        # TODO(synk): torch prints the converged iteration count; there is no clean host-side
        # print from a TPU kernel, only the data-dependent early exit itself is reproduced.

        # ---- epilogue: one exp pass for pi; cost reduction folded onto the MXU.
        pr = pr_ref[...]
        pc = pc_ref[...]
        negc = negc_ref[...]
        pi = jnp.exp(negc + pr + pc)                  # exactly 0 on padded rows/cols
        pi_ref[...] = pi
        col_tot = lax.dot_general(ones_1r, pi * negc, _MM_DN,
                                  preferred_element_type=jnp.float32)          # [1, cols_pad]
        cost_ref[...] = (-epsilon * jnp.sum(col_tot)).reshape(1, 1)

    return kernel


def _vmem_budget_bytes():
    """~85% of the physical per-TensorCore VMEM (generation-aware: 64 MiB v7x, 128 MiB v5e/v6e)."""
    try:
        cap = int(pltpu.get_tpu_info().vmem_capacity_bytes)
    except Exception:
        cap = 0
    if cap <= 0:
        cap = 64 * 1024 * 1024        # conservative fallback = smallest (v7x) physical VMEM
    return int(cap * 0.85)


def sinkhorn_solver(x, y, epsilon=EPSILON, iterations=ITERATIONS, threshold=THRESHOLD):
    x = jnp.asarray(x, jnp.float32)
    y = jnp.asarray(y, jnp.float32)
    n, d = x.shape
    m = y.shape[0]

    # Orientation: larger point set on the lane (last) axis so the [rows, cols] state and pi
    # are lane-dense.  The kernel flips the update order so torch's x-marginal is still updated
    # first; pi is transposed back below.
    swapped = n > m
    rows, cols = (y, x) if swapped else (x, y)
    num_rows, num_cols = int(rows.shape[0]), int(cols.shape[0])

    rows_pad = _round_up(max(num_rows, 8), 8)
    cols_pad = _round_up(max(num_cols, 128), 128)
    d_pad = _round_up(max(d, 128), 128)   # lane-dense loads, full-width MXU cost contraction
    r_p = jnp.pad(rows, ((0, rows_pad - num_rows), (0, d_pad - d)))
    c_p = jnp.pad(cols, ((0, cols_pad - num_cols), (0, d_pad - d)))

    kernel = _make_sinkhorn_kernel(num_rows, num_cols, not swapped,
                                   float(epsilon), int(iterations), float(threshold))

    # Fully-resident footprint: negc scratch + pi + ~3 [rows, cols] loop temporaries + inputs.
    resident = 4 * (7 * rows_pad * cols_pad + (rows_pad + cols_pad) * d_pad) + (2 << 20)
    budget = _vmem_budget_bytes()
    # TODO(synk): problems whose resident set exceeds the VMEM budget need a tiled /
    # dual-TensorCore (v7x) variant; only the fully-VMEM-resident single-core path exists.
    vmem_limit = int(min(budget, max(8 * 1024 * 1024, resident)))

    cost, pi_p = pl.pallas_call(
        kernel,
        out_shape=(
            jax.ShapeDtypeStruct((1, 1), jnp.float32),
            jax.ShapeDtypeStruct((rows_pad, cols_pad), jnp.float32),
        ),
        in_specs=[
            pl.BlockSpec(memory_space=pltpu.MemorySpace.VMEM),
            pl.BlockSpec(memory_space=pltpu.MemorySpace.VMEM),
        ],
        out_specs=(
            pl.BlockSpec(memory_space=pltpu.MemorySpace.VMEM),
            pl.BlockSpec(memory_space=pltpu.MemorySpace.VMEM),
        ),
        scratch_shapes=[
            pltpu.VMEM((rows_pad, cols_pad), jnp.float32),   # -C/eps (masked), read-only in loop
            pltpu.VMEM((rows_pad, 1), jnp.float32),          # row potential / eps
            pltpu.VMEM((1, cols_pad), jnp.float32),          # col potential / eps
        ],
        compiler_params=pltpu.CompilerParams(vmem_limit_bytes=vmem_limit),
    )(r_p, c_p)

    pi = pi_p[:num_rows, :num_cols]
    if swapped:
        pi = pi.T
    return cost[0, 0], pi


# ---------------- pure-numpy reference (mirrors the torch code, 2-D inputs) --------------
def _logsumexp(a, axis):
    mx = np.max(a, axis=axis, keepdims=True)
    return (mx + np.log(np.sum(np.exp(a - mx), axis=axis, keepdims=True))).squeeze(axis)


def sinkhorn_ref(x, y, epsilon=EPSILON, iterations=ITERATIONS, threshold=THRESHOLD):
    x = np.asarray(x, np.float32)
    y = np.asarray(y, np.float32)
    N, M = x.shape[0], y.shape[0]
    C = ((x[:, None, :] - y[None, :, :]) ** 2).sum(-1)
    a = np.full((N,), 1.0 / N, np.float32)
    b = np.full((M,), 1.0 / M, np.float32)
    u = np.zeros((N,), np.float32)
    v = np.zeros((M,), np.float32)
    for _ in range(iterations):
        u0, v0 = u, v
        K = (-C + u[:, None] + v[None, :]) / epsilon
        u = epsilon * (np.log(a + 1e-8) - _logsumexp(K, axis=1)) + u
        Kt = ((-C + u[:, None] + v[None, :]) / epsilon).T
        v = epsilon * (np.log(b + 1e-8) - _logsumexp(Kt, axis=1)) + v
        d = np.abs(u - u0).sum() + np.abs(v - v0).sum()
        if d < threshold:
            break
    K = (-C + u[:, None] + v[None, :]) / epsilon
    pi = np.exp(K)
    cost = (pi * C).sum()
    return cost, pi


if __name__ == "__main__":
    key = jax.random.PRNGKey(0)
    kx, ky, kx2, ky2 = jax.random.split(key, 4)

    # Square problem (N == M): exercises the row-first (unswapped) path.
    N, M, D = 16, 16, 32
    x = jax.random.normal(kx, (N, D), dtype=jnp.float32)
    y = jax.random.normal(ky, (M, D), dtype=jnp.float32)
    cost, pi = sinkhorn_solver(x, y)
    jax.block_until_ready((cost, pi))
    ref_cost, ref_pi = sinkhorn_ref(np.asarray(x), np.asarray(y))
    assert pi.shape == (N, M)
    assert np.allclose(float(cost), ref_cost, rtol=1e-2, atol=1e-3), (float(cost), ref_cost)
    assert np.allclose(np.asarray(pi), ref_pi, rtol=1e-2, atol=1e-3)

    # Rectangular problem (N > M): exercises the lane-orientation swap (column-first path).
    N2, M2 = 24, 16
    x2 = jax.random.normal(kx2, (N2, D), dtype=jnp.float32)
    y2 = jax.random.normal(ky2, (M2, D), dtype=jnp.float32)
    cost2, pi2 = sinkhorn_solver(x2, y2)
    jax.block_until_ready((cost2, pi2))
    ref_cost2, ref_pi2 = sinkhorn_ref(np.asarray(x2), np.asarray(y2))
    assert pi2.shape == (N2, M2)
    assert np.allclose(float(cost2), ref_cost2, rtol=1e-2, atol=1e-3), (float(cost2), ref_cost2)
    assert np.allclose(np.asarray(pi2), ref_pi2, rtol=1e-2, atol=1e-3)

    print("KERNEL_OK")
</pallas_src>

<mosaic_0001>
module attributes {stable_mosaic.version = 11 : i64} {
  func.func @kernel(%arg0: memref<16x128xf32, #tpu.memory_space<vmem>>, %arg1: memref<128x128xf32, #tpu.memory_space<vmem>>, %arg2: memref<1x1xf32, #tpu.memory_space<vmem>>, %arg3: memref<16x128xf32, #tpu.memory_space<vmem>>, %arg4: memref<16x128xf32, #tpu.memory_space<vmem>>, %arg5: memref<16x1xf32, #tpu.memory_space<vmem>>, %arg6: memref<1x128xf32, #tpu.memory_space<vmem>>) attributes {dimension_semantics = [], scalar_prefetch = 0 : i64, scratch_operands = 3 : i64, tpu.core_type = #tpu.core_type<tc>} {
    %c0 = arith.constant 0 : index
    %c0_0 = arith.constant 0 : index
    %0 = vector.load %arg0[%c0, %c0_0] : memref<16x128xf32, #tpu.memory_space<vmem>>, vector<16x128xf32>
    %c0_1 = arith.constant 0 : index
    %c0_2 = arith.constant 0 : index
    %1 = vector.load %arg1[%c0_1, %c0_2] : memref<128x128xf32, #tpu.memory_space<vmem>>, vector<128x128xf32>
    %cst = arith.constant 1.000000e+00 : f32
    %2 = vector.broadcast %cst : f32 to vector<128x1xf32>
    %cst_3 = arith.constant 1.000000e+00 : f32
    %3 = vector.broadcast %cst_3 : f32 to vector<1x16xf32>
    %cst_4 = arith.constant dense<0.000000e+00> : vector<16x128xf32>
    %4 = tpu.matmul %0, %1, %cst_4 {dimension_numbers = #tpu.dot_dimension_numbers<[1], [1], [0], [0], [0, 0, 1, 0], [], []>} : vector<16x128xf32>, vector<128x128xf32>, vector<16x128xf32> -> vector<16x128xf32>
    %5 = arith.mulf %0, %0 : vector<16x128xf32>
    %cst_5 = arith.constant dense<0.000000e+00> : vector<16xf32>
    %6 = vector.multi_reduction <add>, %5, %cst_5 [1] : vector<16x128xf32> to vector<16xf32>
    %7 = vector.shape_cast %6 : vector<16xf32> to vector<16x1xf32>
    %cst_6 = arith.constant 1.000000e+00 : f32
    %8 = vector.broadcast %cst_6 : f32 to vector<1x128xf32>
    %9 = arith.mulf %1, %1 : vector<128x128xf32>
    %cst_7 = arith.constant dense<0.000000e+00> : vector<1x128xf32>
    %10 = tpu.matmul %8, %9, %cst_7 {dimension_numbers = #tpu.dot_dimension_numbers<[1], [1], [0], [0], [0, 0, 1, 0], [], []>} : vector<1x128xf32>, vector<128x128xf32>, vector<1x128xf32> -> vector<1x128xf32>
    %11 = vector.broadcast %7 : vector<16x1xf32> to vector<16x128xf32>
    %12 = vector.broadcast %10 : vector<1x128xf32> to vector<16x128xf32>
    %13 = arith.addf %11, %12 : vector<16x128xf32>
    %cst_8 = arith.constant 2.000000e+00 : f32
    %14 = vector.broadcast %cst_8 : f32 to vector<16x128xf32>
    %15 = arith.mulf %14, %4 : vector<16x128xf32>
    %16 = arith.subf %13, %15 : vector<16x128xf32>
    %17 = tpu.iota {dimensions = array<i32: 0>} : vector<16x1xi32>
    %c16_i32 = arith.constant 16 : i32
    %18 = vector.broadcast %c16_i32 : i32 to vector<16x1xi32>
    %19 = arith.cmpi slt, %17, %18 : vector<16x1xi32>
    %20 = tpu.iota {dimensions = array<i32: 1>} : vector<1x128xi32>
    %c16_i32_9 = arith.constant 16 : i32
    %21 = vector.broadcast %c16_i32_9 : i32 to vector<1x128xi32>
    %22 = arith.cmpi slt, %20, %21 : vector<1x128xi32>
    %23 = vector.broadcast %19 : vector<16x1xi1> to vector<16x128xi1>
    %24 = vector.broadcast %22 : vector<1x128xi1> to vector<16x128xi1>
    %25 = arith.andi %23, %24 : vector<16x128xi1>
    %cst_10 = arith.constant 0.000000e+00 : f32
    %26 = vector.broadcast %cst_10 : f32 to vector<16x128xf32>
    %27 = arith.subf %26, %16 : vector<16x128xf32>
    %cst_11 = arith.constant 1.000000e+01 : f32
    %28 = vector.broadcast %cst_11 : f32 to vector<16x128xf32>
    %29 = arith.mulf %27, %28 : vector<16x128xf32>
    %cst_12 = arith.constant -1.000000e+30 : f32
    %30 = vector.broadcast %cst_12 : f32 to vector<16x128xf32>
    %31 = arith.select %25, %29, %30 : vector<16x128xi1>, vector<16x128xf32>
    %c0_13 = arith.constant 0 : index
    %c0_14 = arith.constant 0 : index
    %32 = vector.load %arg4[%c0_13, %c0_14] : memref<16x128xf32, #tpu.memory_space<vmem>>, vector<16x128xf32>
    tpu.vector_store %arg4[%c0_13, %c0_14], %31 {strides = array<i32>} : memref<16x128xf32, #tpu.memory_space<vmem>>, vector<16x128xf32>,
    %c0_15 = arith.constant 0 : index
    %c0_16 = arith.constant 0 : index
    %33 = vector.load %arg4[%c0_15, %c0_16] : memref<16x128xf32, #tpu.memory_space<vmem>>, vector<16x128xf32>
    %cst_17 = arith.constant dense<0xFF800000> : vector<16xf32>
    %34 = vector.multi_reduction <maximumf>, %33, %cst_17 [1] : vector<16x128xf32> to vector<16xf32>
    %35 = vector.shape_cast %34 : vector<16xf32> to vector<16x1xf32>
    %36 = vector.broadcast %35 : vector<16x1xf32> to vector<16x128xf32>
    %37 = arith.subf %33, %36 : vector<16x128xf32>
    %38 = math.exp %37 : vector<16x128xf32>
    %cst_18 = arith.constant dense<0.000000e+00> : vector<16x1xf32>
    %39 = tpu.matmul %38, %2, %cst_18 {dimension_numbers = #tpu.dot_dimension_numbers<[1], [0], [0], [1], [0, 0, 1, 1], [], []>} : vector<16x128xf32>, vector<128x1xf32>, vector<16x1xf32> -> vector<16x1xf32>
    %40 = math.log %39 : vector<16x1xf32>
    %41 = arith.addf %35, %40 : vector<16x1xf32>
    %cst_19 = arith.constant -2.77258849 : f32
    %42 = vector.broadcast %cst_19 : f32 to vector<16x1xf32>
    %43 = arith.subf %42, %41 : vector<16x1xf32>
    %cst_20 = arith.constant 0.000000e+00 : f32
    %44 = vector.broadcast %cst_20 : f32 to vector<16x1xf32>
    %45 = arith.select %19, %43, %44 : vector<16x1xi1>, vector<16x1xf32>
    %46 = vector.broadcast %45 : vector<16x1xf32> to vector<16x128xf32>
    %47 = arith.addf %33, %46 : vector<16x128xf32>
    %cst_21 = arith.constant dense<0xFF800000> : vector<128xf32>
    %48 = vector.multi_reduction <maximumf>, %47, %cst_21 [0] : vector<16x128xf32> to vector<128xf32>
    %49 = vector.shape_cast %48 : vector<128xf32> to vector<1x128xf32>
    %50 = vector.broadcast %49 : vector<1x128xf32> to vector<16x128xf32>
    %51 = arith.subf %47, %50 : vector<16x128xf32>
    %52 = math.exp %51 : vector<16x128xf32>
    %cst_22 = arith.constant dense<0.000000e+00> : vector<128xf32>
    %53 = vector.multi_reduction <add>, %52, %cst_22 [0] : vector<16x128xf32> to vector<128xf32>
    %54 = vector.shape_cast %53 : vector<128xf32> to vector<1x128xf32>
    %55 = math.log %54 : vector<1x128xf32>
    %56 = arith.addf %49, %55 : vector<1x128xf32>
    %cst_23 = arith.constant -2.77258849 : f32
    %57 = vector.broadcast %cst_23 : f32 to vector<1x128xf32>
    %58 = arith.subf %57, %56 : vector<1x128xf32>
    %cst_24 = arith.constant 0.000000e+00 : f32
    %59 = vector.broadcast %cst_24 : f32 to vector<1x128xf32>
    %60 = arith.select %22, %58, %59 : vector<1x128xi1>, vector<1x128xf32>
    %61 = math.absf %45 : vector<16x1xf32>
    %62 = vector.shape_cast %61 : vector<16x1xf32> to vector<1x16x1xf32>
    %cst_25 = arith.constant dense<0.000000e+00> : vector<1xf32>
    %63 = vector.multi_reduction <add>, %62, %cst_25 [1, 2] : vector<1x16x1xf32> to vector<1xf32>
    %64 = vector.shape_cast %63 : vector<1xf32> to vector<1x1x1xf32>
    %65 = vector.extract %64[0, 0, 0] : f32 from vector<1x1x1xf32>
    %66 = math.absf %60 : vector<1x128xf32>
    %67 = vector.shape_cast %66 : vector<1x128xf32> to vector<1x1x128xf32>
    %cst_26 = arith.constant dense<0.000000e+00> : vector<1xf32>
    %68 = vector.multi_reduction <add>, %67, %cst_26 [1, 2] : vector<1x1x128xf32> to vector<1xf32>
    %69 = vector.shape_cast %68 : vector<1xf32> to vector<1x1x1xf32>
    %70 = vector.extract %69[0, 0, 0] : f32 from vector<1x1x1xf32>
    %71 = arith.addf %65, %70 : f32
    %cst_27 = arith.constant 1.000000e-01 : f32
    %72 = arith.mulf %cst_27, %71 : f32
    %c0_28 = arith.constant 0 : index
    %c0_29 = arith.constant 0 : index
    %73 = vector.load %arg5[%c0_28, %c0_29] : memref<16x1xf32, #tpu.memory_space<vmem>>, vector<16x1xf32>
    tpu.vector_store %arg5[%c0_28, %c0_29], %45 {strides = array<i32>} : memref<16x1xf32, #tpu.memory_space<vmem>>, vector<16x1xf32>,
    %c0_30 = arith.constant 0 : index
    %c0_31 = arith.constant 0 : index
    %74 = vector.load %arg6[%c0_30, %c0_31] : memref<1x128xf32, #tpu.memory_space<vmem>>, vector<1x128xf32>
    tpu.vector_store %arg6[%c0_30, %c0_31], %60 {strides = array<i32>} : memref<1x128xf32, #tpu.memory_space<vmem>>, vector<1x128xf32>,
    %c1_i32 = arith.constant 1 : i32
    %75:2 = scf.while (%arg7 = %c1_i32, %arg8 = %72) : (i32, f32) -> (i32, f32) {
      %c100_i32 = arith.constant 100 : i32
      %94 = arith.cmpi slt, %arg7, %c100_i32 : i32
      %cst_45 = arith.constant 1.000000e-01 : f32
      %95 = arith.cmpf oge, %arg8, %cst_45 : f32
      %96 = arith.andi %94, %95 : i1
      scf.condition(%96) %arg7, %arg8 : i32, f32
    } do {
    ^bb0(%arg7: i32, %arg8: f32):
      %c0_45 = arith.constant 0 : index
      %c0_46 = arith.constant 0 : index
      %94 = vector.load %arg4[%c0_45, %c0_46] : memref<16x128xf32, #tpu.memory_space<vmem>>, vector<16x128xf32>
      %c0_47 = arith.constant 0 : index
      %c0_48 = arith.constant 0 : index
      %95 = vector.load %arg5[%c0_47, %c0_48] : memref<16x1xf32, #tpu.memory_space<vmem>>, vector<16x1xf32>
      %c0_49 = arith.constant 0 : index
      %c0_50 = arith.constant 0 : index
      %96 = vector.load %arg6[%c0_49, %c0_50] : memref<1x128xf32, #tpu.memory_space<vmem>>, vector<1x128xf32>
      %cst_51 = arith.constant 1.000000e-01 : f32
      %97 = arith.cmpf oge, %arg8, %cst_51 : f32
      %c100_i32 = arith.constant 100 : i32
      %98 = arith.cmpi slt, %arg7, %c100_i32 : i32
      %99 = arith.andi %97, %98 : i1
      %100 = vector.broadcast %95 : vector<16x1xf32> to vector<16x128xf32>
      %101 = arith.addf %94, %100 : vector<16x128xf32>
      %102 = vector.broadcast %96 : vector<1x128xf32> to vector<16x128xf32>
      %103 = arith.addf %101, %102 : vector<16x128xf32>
      %cst_52 = arith.constant dense<0xFF800000> : vector<16xf32>
      %104 = vector.multi_reduction <maximumf>, %103, %cst_52 [1] : vector<16x128xf32> to vector<16xf32>
      %105 = vector.shape_cast %104 : vector<16xf32> to vector<16x1xf32>
      %106 = vector.broadcast %105 : vector<16x1xf32> to vector<16x128xf32>
      %107 = arith.subf %103, %106 : vector<16x128xf32>
      %108 = math.exp %107 : vector<16x128xf32>
      %cst_53 = arith.constant dense<0.000000e+00> : vector<16x1xf32>
      %109 = tpu.matmul %108, %2, %cst_53 {dimension_numbers = #tpu.dot_dimension_numbers<[1], [0], [0], [1], [0, 0, 1, 1], [], []>} : vector<16x128xf32>, vector<128x1xf32>, vector<16x1xf32> -> vector<16x1xf32>
      %110 = math.log %109 : vector<16x1xf32>
      %111 = arith.addf %105, %110 : vector<16x1xf32>
      %cst_54 = arith.constant -2.77258849 : f32
      %112 = vector.broadcast %cst_54 : f32 to vector<16x1xf32>
      %113 = arith.subf %112, %111 : vector<16x1xf32>
      %114 = arith.addf %113, %95 : vector<16x1xf32>
      %cst_55 = arith.constant 0.000000e+00 : f32
      %115 = vector.broadcast %cst_55 : f32 to vector<16x1xf32>
      %116 = arith.select %19, %114, %115 : vector<16x1xi1>, vector<16x1xf32>
      %117 = arith.subf %116, %95 : vector<16x1xf32>
      %118 = arith.addf %117, %105 : vector<16x1xf32>
      %119 = math.exp %118 : vector<16x1xf32>
      %120 = vector.broadcast %119 : vector<16x1xf32> to vector<16x128xf32>
      %121 = arith.mulf %108, %120 : vector<16x128xf32>
      %cst_56 = arith.constant dense<0.000000e+00> : vector<1x128xf32>
      %122 = tpu.matmul %3, %121, %cst_56 {dimension_numbers = #tpu.dot_dimension_numbers<[1], [0], [0], [1], [0, 0, 1, 1], [], []>} : vector<1x16xf32>, vector<16x128xf32>, vector<1x128xf32> -> vector<1x128xf32>
      %cst_57 = arith.constant 9.99999991E-38 : f32
      %123 = vector.broadcast %cst_57 : f32 to vector<1x128xf32>
      %124 = arith.maximumf %122, %123 : vector<1x128xf32>
      %125 = math.log %124 : vector<1x128xf32>
      %cst_58 = arith.constant -2.77258849 : f32
      %126 = vector.broadcast %cst_58 : f32 to vector<1x128xf32>
      %127 = arith.subf %126, %125 : vector<1x128xf32>
      %128 = arith.addf %127, %96 : vector<1x128xf32>
      %cst_59 = arith.constant 0.000000e+00 : f32
      %129 = vector.broadcast %cst_59 : f32 to vector<1x128xf32>
      %130 = arith.select %22, %128, %129 : vector<1x128xi1>, vector<1x128xf32>
      %131 = arith.subf %116, %95 : vector<16x1xf32>
      %132 = math.absf %131 : vector<16x1xf32>
      %133 = vector.shape_cast %132 : vector<16x1xf32> to vector<1x16x1xf32>
      %cst_60 = arith.constant dense<0.000000e+00> : vector<1xf32>
      %134 = vector.multi_reduction <add>, %133, %cst_60 [1, 2] : vector<1x16x1xf32> to vector<1xf32>
      %135 = vector.shape_cast %134 : vector<1xf32> to vector<1x1x1xf32>
      %136 = vector.extract %135[0, 0, 0] : f32 from vector<1x1x1xf32>
      %137 = arith.subf %130, %96 : vector<1x128xf32>
      %138 = math.absf %137 : vector<1x128xf32>
      %139 = vector.shape_cast %138 : vector<1x128xf32> to vector<1x1x128xf32>
      %cst_61 = arith.constant dense<0.000000e+00> : vector<1xf32>
      %140 = vector.multi_reduction <add>, %139, %cst_61 [1, 2] : vector<1x1x128xf32> to vector<1xf32>
      %141 = vector.shape_cast %140 : vector<1xf32> to vector<1x1x1xf32>
      %142 = vector.extract %141[0, 0, 0] : f32 from vector<1x1x1xf32>
      %143 = arith.addf %136, %142 : f32
      %cst_62 = arith.constant 1.000000e-01 : f32
      %144 = arith.mulf %cst_62, %143 : f32
      %145 = arith.select %99, %116, %95 : vector<16x1xf32>
      %c0_63 = arith.constant 0 : index
      %c0_64 = arith.constant 0 : index
      %146 = vector.load %arg5[%c0_63, %c0_64] : memref<16x1xf32, #tpu.memory_space<vmem>>, vector<16x1xf32>
      tpu.vector_store %arg5[%c0_63, %c0_64], %145 {strides = array<i32>} : memref<16x1xf32, #tpu.memory_space<vmem>>, vector<16x1xf32>,
      %147 = arith.select %99, %130, %96 : vector<1x128xf32>
      %c0_65 = arith.constant 0 : index
      %c0_66 = arith.constant 0 : index
      %148 = vector.load %arg6[%c0_65, %c0_66] : memref<1x128xf32, #tpu.memory_space<vmem>>, vector<1x128xf32>
      tpu.vector_store %arg6[%c0_65, %c0_66], %147 {strides = array<i32>} : memref<1x128xf32, #tpu.memory_space<vmem>>, vector<1x128xf32>,
      %149 = arith.select %99, %144, %arg8 : f32
      %c1_i32_67 = arith.constant 1 : i32
      %150 = arith.addi %arg7, %c1_i32_67 : i32
      %151 = arith.select %99, %150, %arg7 : i32
      %c0_68 = arith.constant 0 : index
      %c0_69 = arith.constant 0 : index
      %152 = vector.load %arg5[%c0_68, %c0_69] : memref<16x1xf32, #tpu.memory_space<vmem>>, vector<16x1xf32>
      %c0_70 = arith.constant 0 : index
      %c0_71 = arith.constant 0 : index
      %153 = vector.load %arg6[%c0_70, %c0_71] : memref<1x128xf32, #tpu.memory_space<vmem>>, vector<1x128xf32>
      %cst_72 = arith.constant 1.000000e-01 : f32
      %154 = arith.cmpf oge, %149, %cst_72 : f32
      %c100_i32_73 = arith.constant 100 : i32
      %155 = arith.cmpi slt, %151, %c100_i32_73 : i32
      %156 = arith.andi %154, %155 : i1
      %157 = vector.broadcast %152 : vector<16x1xf32> to vector<16x128xf32>
      %158 = arith.addf %94, %157 : vector<16x128xf32>
      %159 = vector.broadcast %153 : vector<1x128xf32> to vector<16x128xf32>
      %160 = arith.addf %158, %159 : vector<16x128xf32>
      %cst_74 = arith.constant dense<0xFF800000> : vector<16xf32>
      %161 = vector.multi_reduction <maximumf>, %160, %cst_74 [1] : vector<16x128xf32> to vector<16xf32>
      %162 = vector.shape_cast %161 : vector<16xf32> to vector<16x1xf32>
      %163 = vector.broadcast %162 : vector<16x1xf32> to vector<16x128xf32>
      %164 = arith.subf %160, %163 : vector<16x128xf32>
      %165 = math.exp %164 : vector<16x128xf32>
      %cst_75 = arith.constant dense<0.000000e+00> : vector<16x1xf32>
      %166 = tpu.matmul %165, %2, %cst_75 {dimension_numbers = #tpu.dot_dimension_numbers<[1], [0], [0], [1], [0, 0, 1, 1], [], []>} : vector<16x128xf32>, vector<128x1xf32>, vector<16x1xf32> -> vector<16x1xf32>
      %167 = math.log %166 : vector<16x1xf32>
      %168 = arith.addf %162, %167 : vector<16x1xf32>
      %cst_76 = arith.constant -2.77258849 : f32
      %169 = vector.broadcast %cst_76 : f32 to vector<16x1xf32>
      %170 = arith.subf %169, %168 : vector<16x1xf32>
      %171 = arith.addf %170, %152 : vector<16x1xf32>
      %cst_77 = arith.constant 0.000000e+00 : f32
      %172 = vector.broadcast %cst_77 : f32 to vector<16x1xf32>
      %173 = arith.select %19, %171, %172 : vector<16x1xi1>, vector<16x1xf32>
      %174 = arith.subf %173, %152 : vector<16x1xf32>
      %175 = arith.addf %174, %162 : vector<16x1xf32>
      %176 = math.exp %175 : vector<16x1xf32>
      %177 = vector.broadcast %176 : vector<16x1xf32> to vector<16x128xf32>
      %178 = arith.mulf %165, %177 : vector<16x128xf32>
      %cst_78 = arith.constant dense<0.000000e+00> : vector<1x128xf32>
      %179 = tpu.matmul %3, %178, %cst_78 {dimension_numbers = #tpu.dot_dimension_numbers<[1], [0], [0], [1], [0, 0, 1, 1], [], []>} : vector<1x16xf32>, vector<16x128xf32>, vector<1x128xf32> -> vector<1x128xf32>
      %cst_79 = arith.constant 9.99999991E-38 : f32
      %180 = vector.broadcast %cst_79 : f32 to vector<1x128xf32>
      %181 = arith.maximumf %179, %180 : vector<1x128xf32>
      %182 = math.log %181 : vector<1x128xf32>
      %cst_80 = arith.constant -2.77258849 : f32
      %183 = vector.broadcast %cst_80 : f32 to vector<1x128xf32>
      %184 = arith.subf %183, %182 : vector<1x128xf32>
      %185 = arith.addf %184, %153 : vector<1x128xf32>
      %cst_81 = arith.constant 0.000000e+00 : f32
      %186 = vector.broadcast %cst_81 : f32 to vector<1x128xf32>
      %187 = arith.select %22, %185, %186 : vector<1x128xi1>, vector<1x128xf32>
      %188 = arith.subf %173, %152 : vector<16x1xf32>
      %189 = math.absf %188 : vector<16x1xf32>
      %190 = vector.shape_cast %189 : vector<16x1xf32> to vector<1x16x1xf32>
      %cst_82 = arith.constant dense<0.000000e+00> : vector<1xf32>
      %191 = vector.multi_reduction <add>, %190, %cst_82 [1, 2] : vector<1x16x1xf32> to vector<1xf32>
      %192 = vector.shape_cast %191 : vector<1xf32> to vector<1x1x1xf32>
      %193 = vector.extract %192[0, 0, 0] : f32 from vector<1x1x1xf32>
      %194 = arith.subf %187, %153 : vector<1x128xf32>
      %195 = math.absf %194 : vector<1x128xf32>
      %196 = vector.shape_cast %195 : vector<1x128xf32> to vector<1x1x128xf32>
      %cst_83 = arith.constant dense<0.000000e+00> : vector<1xf32>
      %197 = vector.multi_reduction <add>, %196, %cst_83 [1, 2] : vector<1x1x128xf32> to vector<1xf32>
      %198 = vector.shape_cast %197 : vector<1xf32> to vector<1x1x1xf32>
      %199 = vector.extract %198[0, 0, 0] : f32 from vector<1x1x1xf32>
      %200 = arith.addf %193, %199 : f32
      %cst_84 = arith.constant 1.000000e-01 : f32
      %201 = arith.mulf %cst_84, %200 : f32
      %202 = arith.select %156, %173, %152 : vector<16x1xf32>
      %c0_85 = arith.constant 0 : index
      %c0_86 = arith.constant 0 : index
      %203 = vector.load %arg5[%c0_85, %c0_86] : memref<16x1xf32, #tpu.memory_space<vmem>>, vector<16x1xf32>
      tpu.vector_store %arg5[%c0_85, %c0_86], %202 {strides = array<i32>} : memref<16x1xf32, #tpu.memory_space<vmem>>, vector<16x1xf32>,
      %204 = arith.select %156, %187, %153 : vector<1x128xf32>
      %c0_87 = arith.constant 0 : index
      %c0_88 = arith.constant 0 : index
      %205 = vector.load %arg6[%c0_87, %c0_88] : memref<1x128xf32, #tpu.memory_space<vmem>>, vector<1x128xf32>
      tpu.vector_store %arg6[%c0_87, %c0_88], %204 {strides = array<i32>} : memref<1x128xf32, #tpu.memory_space<vmem>>, vector<1x128xf32>,
      %206 = arith.select %156, %201, %149 : f32
      %c1_i32_89 = arith.constant 1 : i32
      %207 = arith.addi %151, %c1_i32_89 : i32
      %208 = arith.select %156, %207, %151 : i32
      scf.yield %208, %206 : i32, f32
    }
    %c0_32 = arith.constant 0 : index
    %c0_33 = arith.constant 0 : index
    %76 = vector.load %arg5[%c0_32, %c0_33] : memref<16x1xf32, #tpu.memory_space<vmem>>, vector<16x1xf32>
    %c0_34 = arith.constant 0 : index
    %c0_35 = arith.constant 0 : index
    %77 = vector.load %arg6[%c0_34, %c0_35] : memref<1x128xf32, #tpu.memory_space<vmem>>, vector<1x128xf32>
    %c0_36 = arith.constant 0 : index
    %c0_37 = arith.constant 0 : index
    %78 = vector.load %arg4[%c0_36, %c0_37] : memref<16x128xf32, #tpu.memory_space<vmem>>, vector<16x128xf32>
    %79 = vector.broadcast %76 : vector<16x1xf32> to vector<16x128xf32>
    %80 = arith.addf %78, %79 : vector<16x128xf32>
    %81 = vector.broadcast %77 : vector<1x128xf32> to vector<16x128xf32>
    %82 = arith.addf %80, %81 : vector<16x128xf32>
    %83 = math.exp %82 : vector<16x128xf32>
    %c0_38 = arith.constant 0 : index
    %c0_39 = arith.constant 0 : index
    %84 = vector.load %arg3[%c0_38, %c0_39] : memref<16x128xf32, #tpu.memory_space<vmem>>, vector<16x128xf32>
    tpu.vector_store %arg3[%c0_38, %c0_39], %83 {strides = array<i32>} : memref<16x128xf32, #tpu.memory_space<vmem>>, vector<16x128xf32>,
    %85 = arith.mulf %83, %78 : vector<16x128xf32>
    %cst_40 = arith.constant dense<0.000000e+00> : vector<1x128xf32>
    %86 = tpu.matmul %3, %85, %cst_40 {dimension_numbers = #tpu.dot_dimension_numbers<[1], [0], [0], [1], [0, 0, 1, 1], [], []>} : vector<1x16xf32>, vector<16x128xf32>, vector<1x128xf32> -> vector<1x128xf32>
    %87 = vector.shape_cast %86 : vector<1x128xf32> to vector<1x1x128xf32>
    %cst_41 = arith.constant dense<0.000000e+00> : vector<1xf32>
    %88 = vector.multi_reduction <add>, %87, %cst_41 [1, 2] : vector<1x1x128xf32> to vector<1xf32>
    %89 = vector.shape_cast %88 : vector<1xf32> to vector<1x1x1xf32>
    %90 = vector.extract %89[0, 0, 0] : f32 from vector<1x1x1xf32>
    %cst_42 = arith.constant -1.000000e-01 : f32
    %91 = arith.mulf %cst_42, %90 : f32
    %92 = vector.broadcast %91 : f32 to vector<1x1xf32>
    %c0_43 = arith.constant 0 : index
    %c0_44 = arith.constant 0 : index
    %93 = vector.load %arg2[%c0_43, %c0_44] : memref<1x1xf32, #tpu.memory_space<vmem>>, vector<1x1xf32>
    tpu.vector_store %arg2[%c0_43, %c0_44], %92 {strides = array<i32>} : memref<1x1xf32, #tpu.memory_space<vmem>>, vector<1x1xf32>,
    return
  }
}

</mosaic_0001>

<bundles_post_ra>
// kernel: tpu_custom_call.1
= control target key start
LH: loop header
LB: loop body
LE: loop exit
PB: predicated region body
PF: predicated region fallthrough
CT: control target
= control target key end

     0   :  { %9 = vsyncpa [#allocation6], 0  ;;  %s2049_s0 = inlined_call_operand.hbm [shape: f32[16,128], index: 0, kind: input, shape index: {}]   ;;  %s2050_s1 = inlined_call_operand.hbm [shape: f32[128,128], index: 1, kind: input, shape index: {}]   ;;  %s2051_s2 = inlined_call_operand.hbm [shape: f32[1,1], index: 2, kind: output, shape index: {0}]   ;;  %s2052_s3 = inlined_call_operand.hbm [shape: f32[16,128], index: 3, kind: output, shape index: {1}]  }
   0x1   :  { %10 = vsyncpa [#allocation9], 0 }
   0x2   :  { %11 = vsyncpa [#allocation7], 0 }
   0x3   :  { %12 = vsyncpa [#allocation12], 0  ;;  %s1755_s12 = smov [#allocation5]   ;;  %s1643_s16 = scalar_lea.hbm %s2049_s0, 256 }
   0x4   :  { %s18_s13 = sshll.u32 %s1755_s12, 4  ;;  %p1644_p0 = scmp.ne.s32.totalorder %s2049_s0, %s1643_s16  ;;  %s19_s13 = int_to_ptr.vmem [resolvable:$true] %s18_s13 }
   0x5   :  { %p1647_p1 = scmp.lt.u32.totalorder %s1643_s16, %s2049_s0 }
   0x7   :  { %p1649_p2 = pnand %p1647_p1, %p1644_p0 }
   0x9   :  { %1652 = shalt.err (!%p1649_p2)
}
   0xa   :  { %s1653_s21 = scalar_lea.vmem %s19_s13, 256  ;;  %p1658_p4 = scmp.lt.s32.totalorder %s19_s13, %s19_s13 }
   0xb   :  { %p1654_p3 = scmp.ne.s32.totalorder %s19_s13, %s1653_s21  ;;  %p1659_p5 = scmp.lt.s32.totalorder %s1653_s21, %s1653_s21 }
   0xd   :  { %p1660_p6 = por %p1659_p5, %p1658_p4 }
   0xf   :  { %p1661_p7 = pnand %p1660_p6, %p1654_p3 }
  0x11   :  { %1664 = shalt.err (!%p1661_p7)
}
  0x12   :  { %s1756_s22 = smov 128   ;;  %s1757_s23 = smov 8  }
  0x13   :  { %24 = dma.hbm_to_vmem [thread:$0]  %s2049_s0, 256, %s19_s13, [#allocation6], %s1756_s22, %s1756_s22, %s1757_s23  }
  0x14   :  { %s1758_s26 = smov [#allocation8]   ;;  %s1665_s30 = scalar_lea.hbm %s2050_s1, 2048 }
  0x15   :  { %s30_s27 = sshll.u32 %s1758_s26, 4  ;;  %p1666_p8 = scmp.ne.s32.totalorder %s2050_s1, %s1665_s30  ;;  %s31_s27 = int_to_ptr.vmem [resolvable:$true] %s30_s27 }
  0x16   :  { %p1669_p9 = scmp.lt.u32.totalorder %s1665_s30, %s2050_s1 }
  0x18   :  { %p1671_p10 = pnand %p1669_p9, %p1666_p8 }
  0x1a   :  { %1674 = shalt.err (!%p1671_p10)
}
  0x1b   :  { %s1675_s8 = scalar_lea.vmem %s31_s27, 2048  ;;  %p1680_p12 = scmp.lt.s32.totalorder %s31_s27, %s31_s27 }
  0x1c   :  { %p1676_p11 = scmp.ne.s32.totalorder %s31_s27, %s1675_s8  ;;  %p1681_p13 = scmp.lt.s32.totalorder %s1675_s8, %s1675_s8 }
  0x1e   :  { %p1682_p0 = por %p1681_p13, %p1680_p12 }
  0x20   :  { %p1683_p1 = pnand %p1682_p0, %p1676_p11 }
  0x22   :  { %1686 = shalt.err (!%p1683_p1)
}
  0x23   :  { %36 = dma.hbm_to_vmem [thread:$0]  %s2050_s1, 2048, %s31_s27, [#allocation9], %s1756_s22, %s1756_s22, %s1757_s23  }
  0x24   :  { %1739 = dma.done.wait [#allocation6], 256  }
  0x25   :  { %1740 = vsyncadd [#allocation6], 4294967040 }
  0x26   :  { %1741 = dma.done.wait [#allocation9], 2048  }
  0x27   :  { %1742 = vsyncadd [#allocation9], 4294965248  ;;  %v1759_v0 = vmov 0.0|0.0   ;;  %vm1760_vm0 = vmmov 0   ;;  %v1761_v1 = vmov 0.0   ;;  %v45_v2 = vld [vmem:[#allocation8] sm:$0xff]  ;;  %v228_v56 = vlaneseq }
  0x28   :  { %1463 = vmatprep.subr.bf16.mxu1 %v1759_v0  ;;  %1302 = vmatprep.mubr.msk.f32.mxu1 %vm1760_vm0, %v1761_v1  ;;  %v46_v3 = vld [vmem:[#allocation8 + $0x8] sm:$0xff]  ;;  %v47_v4 = vld [vmem:[#allocation8 + $0x10] sm:$0xff]  ;;  %v142_v6 = vmul.f32 %v45_v2, %v45_v2  ;;  %v48_v8 = vld [vmem:[#allocation8 + $0x18] sm:$0xff]  ;;  %v1762_v54 = vmov 1.0   ;;  %v1763_v55 = vmov 1.0|1.0  }
  0x29   :  { %v1431_v5 = vpack.c.bf16 %v46_v3, %v45_v2  ;;  %v143_v7 = vmul.f32 %v46_v3, %v46_v3  ;;  %v1435_v9 = vpack.c.bf16 %v48_v8, %v47_v4  ;;  %v144_v11 = vmul.f32 %v47_v4, %v47_v4  ;;  %v43_v13 = vld [vmem:[#allocation5] sm:$0xff]  ;;  %v49_v14 = vld [vmem:[#allocation8 + $0x20] sm:$0xff]  ;;  %v50_v15 = vld [vmem:[#allocation8 + $0x28] sm:$0xff] }
  0x2a   :  { %v145_v12 = vmul.f32 %v48_v8, %v48_v8  ;;  %1267 = vmatprep.mubr.f32.mxu0 %v43_v13  ;;  %v136_v16 = vmul.f32 %v43_v13, %v43_v13  ;;  %v1439_v18 = vpack.c.bf16 %v50_v15, %v49_v14  ;;  %v44_v19 = vld [vmem:[#allocation5 + $0x8] sm:$0xff]  ;;  %v146_v21 = vmul.f32 %v49_v14, %v49_v14  ;;  %v51_v23 = vld [vmem:[#allocation8 + $0x30] sm:$0xff]  ;;  %v53_v29 = vld [vmem:[#allocation8 + $0x40] sm:$0xff] }
  0x2b   :  { %1432 = vmatprep.subr.bf16.mxu0 %v1431_v5  ;;  %v1464_v10 = vpack.c.bf16 %v143_v7, %v142_v6  ;;  %v137_v20 = vmul.f32 %v44_v19, %v44_v19  ;;  %v147_v22 = vmul.f32 %v50_v15, %v50_v15  ;;  %v52_v24 = vld [vmem:[#allocation8 + $0x38] sm:$0xff]  ;;  %v148_v27 = vmul.f32 %v51_v23, %v51_v23  ;;  %v54_v30 = vld [vmem:[#allocation8 + $0x48] sm:$0xff]  ;;  %v55_v35 = vld [vmem:[#allocation8 + $0x50] sm:$0xff] }
  0x2c   :  { %1434 = vmatpush3.bf16.xpose.msra.mxu0 %v1431_v5  ;;  %v1467_v17 = vpack.c.bf16 %v145_v12, %v144_v11  ;;  %138 = vadd.xlane.f32.xlu0 %v136_v16  ;;  %v1443_v26 = vpack.c.bf16 %v52_v24, %v51_v23  ;;  %v149_v28 = vmul.f32 %v52_v24, %v52_v24  ;;  %v56_v36 = vld [vmem:[#allocation8 + $0x58] sm:$0xff]  ;;  %v57_v41 = vld [vmem:[#allocation8 + $0x60] sm:$0xff]  ;;  %v58_v42 = vld [vmem:[#allocation8 + $0x68] sm:$0xff]  ;;  %v229_v58 = vshrl.u32 %v228_v56, 7 }
  0x2d   :  { %1465 = vmatpush3.bf16.xpose.msra.mxu1 %v1464_v10  ;;  %1436 = vmatprep.subr.bf16.mxu0 %v1435_v9  ;;  %v1470_v25 = vpack.c.bf16 %v147_v22, %v146_v21  ;;  %v1447_v32 = vpack.c.bf16 %v54_v30, %v53_v29  ;;  %v150_v33 = vmul.f32 %v53_v29, %v53_v29  ;;  %v59_v47 = vld [vmem:[#allocation8 + $0x70] sm:$0xff]  ;;  %v60_v48 = vld [vmem:[#allocation8 + $0x78] sm:$0xff]  ;;  %v1837_v8 = vand.u32 127, %v228_v56 }
  0x2e   :  { %1466 = vmatprep.subr.bf16.mxu1 %v1759_v0  ;;  %v1473_v31 = vpack.c.bf16 %v149_v28, %v148_v27  ;;  %v151_v34 = vmul.f32 %v54_v30, %v54_v30  ;;  %v1451_v38 = vpack.c.bf16 %v56_v36, %v55_v35  ;;  %v152_v39 = vmul.f32 %v55_v35, %v55_v35 }
  0x2f   :  { %v153_v40 = vmul.f32 %v56_v36, %v56_v36  ;;  %v1455_v44 = vpack.c.bf16 %v58_v42, %v57_v41  ;;  %v154_v45 = vmul.f32 %v57_v41, %v57_v41  ;;  %v155_v46 = vmul.f32 %v58_v42, %v58_v42 }
  0x30   :  { %140 = vadd.xlane.f32.xlu0 %v137_v20  ;;  %v1476_v37 = vpack.c.bf16 %v151_v34, %v150_v33  ;;  %v1459_v50 = vpack.c.bf16 %v60_v48, %v59_v47  ;;  %v156_v51 = vmul.f32 %v59_v47, %v59_v47  ;;  %v157_v52 = vmul.f32 %v60_v48, %v60_v48 }
  0x31   :  { %v1479_v43 = vpack.c.bf16 %v153_v40, %v152_v39  ;;  %v1482_v49 = vpack.c.bf16 %v155_v46, %v154_v45  ;;  %v1834_v59 = vsub.s32 0, %v229_v58  ;;  %vm245_vm1 = vcmp.lt.s32.totalorder %v1837_v8, 16 }
  0x32   :  { %v1485_v53 = vpack.c.bf16 %v157_v52, %v156_v51  ;;  %vm398_vm2 = vcmask 7168   ;;  %vm412_vm3 = vcmask 1040384  }
  0x34   :  { %1438 = vmatpush3.bf16.xpose.msra.mxu0 %v1435_v9 }
  0x35   :  { %1468 = vmatpush3.bf16.xpose.msra.mxu1 %v1467_v17  ;;  %1440 = vmatprep.subr.bf16.mxu0 %v1439_v18 }
  0x36   :  { %1469 = vmatprep.subr.bf16.mxu1 %v1759_v0 }
  0x3c   :  { %1442 = vmatpush3.bf16.xpose.msra.mxu0 %v1439_v18 }
  0x3d   :  { %1471 = vmatpush3.bf16.xpose.msra.mxu1 %v1470_v25  ;;  %1444 = vmatprep.subr.bf16.mxu0 %v1443_v26  ;;  %v1764_v25 = vmov 0  }
  0x3e   :  { %1472 = vmatprep.subr.bf16.mxu1 %v1759_v0  ;;  %1593 = vset.pattern.permute.xlu1 %v1764_v25 }
  0x3f   :  { %1592 = vset.pattern.permute.xlu0 %v1764_v25 }
  0x44   :  { %1446 = vmatpush3.bf16.xpose.msra.mxu0 %v1443_v26 }
  0x45   :  { %1474 = vmatpush3.bf16.xpose.msra.mxu1 %v1473_v31  ;;  %1448 = vmatprep.subr.bf16.mxu0 %v1447_v32 }
  0x46   :  { %1475 = vmatprep.subr.bf16.mxu1 %v1759_v0 }
  0x4c   :  { %1450 = vmatpush3.bf16.xpose.msra.mxu0 %v1447_v32 }
  0x4d   :  { %1477 = vmatpush3.bf16.xpose.msra.mxu1 %v1476_v37  ;;  %1452 = vmatprep.subr.bf16.mxu0 %v1451_v38 }
  0x4e   :  { %1478 = vmatprep.subr.bf16.mxu1 %v1759_v0 }
  0x54   :  { %1454 = vmatpush3.bf16.xpose.msra.mxu0 %v1451_v38 }
  0x55   :  { %1480 = vmatpush3.bf16.xpose.msra.mxu1 %v1479_v43  ;;  %1456 = vmatprep.subr.bf16.mxu0 %v1455_v44 }
  0x56   :  { %1481 = vmatprep.subr.bf16.mxu1 %v1759_v0 }
  0x5c   :  { %1458 = vmatpush3.bf16.xpose.msra.mxu0 %v1455_v44 }
  0x5d   :  { %1483 = vmatpush3.bf16.xpose.msra.mxu1 %v1482_v49  ;;  %1460 = vmatprep.subr.bf16.mxu0 %v1459_v50 }
  0x5e   :  { %1484 = vmatprep.subr.bf16.mxu1 %v1759_v0 }
  0x64   :  { %1462 = vmatpush3.bf16.xpose.msra.mxu0 %v1459_v50 }
  0x65   :  { %1486 = vmatpush3.bf16.xpose.msra.mxu1 %v1485_v53  ;;  %1487 = vmatprep.subr.bf16.mxu0 %v1763_v55 }
  0x6b   :  { %1268 = vmatmul.mubr.f32.vlgmr.msra.gmra.mrb[0].mxu0 %v44_v19 }
  0x6c   :  { %1303 = vmatmul.mubr.f32.vlgmr.msra.gmra.mrb[0].mxu1 %v1762_v54  ;;  %1488 = vmatpush3.bf16.msra.mxu0 %v1763_v55 }
  0x6d   :  { %1489 = vmatprep.subr.bf16.mxu0 %v1763_v55 }
  0x70   :  { %1490 = vmatpush3.bf16.msra.mxu0 %v1763_v55 }
  0x71   :  { %1491 = vmatprep.subr.bf16.mxu0 %v1763_v55 }
  0x74   :  { %1492 = vmatpush3.bf16.msra.mxu0 %v1763_v55 }
  0x75   :  { %1493 = vmatprep.subr.bf16.mxu0 %v1763_v55 }
  0x78   :  { %1494 = vmatpush3.bf16.msra.mxu0 %v1763_v55 }
  0x79   :  { %1495 = vmatprep.subr.bf16.mxu0 %v1763_v55 }
  0x7c   :  { %1496 = vmatpush3.bf16.msra.mxu0 %v1763_v55 }
  0x7d   :  { %1497 = vmatprep.subr.bf16.mxu0 %v1763_v55 }
  0x80   :  { %1498 = vmatpush3.bf16.msra.mxu0 %v1763_v55 }
  0x81   :  { %1499 = vmatprep.subr.bf16.mxu0 %v1763_v55 }
  0x84   :  { %1500 = vmatpush3.bf16.msra.mxu0 %v1763_v55 }
  0x85   :  { %1501 = vmatprep.subr.bf16.mxu0 %v1763_v55 }
  0x88   :  { %1502 = vmatpush3.bf16.msra.mxu0 %v1763_v55 }
  0xb9   :  { %v139_v57 = vpop.xlane.xlu0 %138 }
  0xbd   :  { %v141_v61 = vpop.xlane.xlu0 %140 }
 0x13e   :  { %v1269_v60 = vpop.f32.mrb[0].mxu0 }
 0x13f   :  { %v224_v62 = vpop.f32.mrb[0].mxu1  ;;  %v127_v63 = vpop.f32.mrb[1].mxu0  ;;  %v235_v2 = vmul.f32 2.0, %v1269_v60 }
 0x140   :  { %v231_v3 = vrot.slane %v224_v62, %v1834_v59  ;;  %v234_v4 = vmul.f32 2.0, %v127_v63  ;;  %v1304_v5 = vpop.f32.mrb[1].mxu1 }
 0x142   :  { %v232_v6 = vadd.f32 %v231_v3, %v139_v57  ;;  %v233_v7 = vadd.f32 %v231_v3, %v141_v61 }
 0x144   :  { %v236_v9 = vsub.f32 %v232_v6, %v234_v4  ;;  %v237_v10 = vsub.f32 %v233_v7, %v235_v2 }
 0x146   :  { %v254_v11 = vsub.f32 0.0, %v236_v9  ;;  %v255_v12 = vsub.f32 0.0, %v237_v10 }
 0x148   :  { %v256_v13 = vmul.f32 10.0, %v254_v11  ;;  %v257_v14 = vmul.f32 10.0, %v255_v12 }
 0x14a   :  { %v258_v15 = vsel %vm245_vm1, %v256_v13, -1e+30  ;;  %v259_v16 = vsel %vm245_vm1, %v257_v14, -1e+30 }
 0x14b   :  { %260 = vst [vmem:[#allocation2] sm:$0xff] %v258_v15  ;;  %261 = vst [vmem:[#allocation2 + $0x8] sm:$0xff] %v259_v16  ;;  %264 = vmax.xlane.f32.xlu1 %v258_v15 }
 0x14f   :  { %266 = vmax.xlane.f32.xlu1 %v259_v16 }
 0x1d8   :  { %v265_v17 = vpop.xlane.xlu1 %264 }
 0x1d9   :  { %v268_v18 = vsub.f32 %v258_v15, %v265_v17 }
 0x1db   :  { %v270_v19 = vmul.f32 1.442695, %v268_v18 }
 0x1dc   :  { %v267_v20 = vpop.xlane.xlu1 %266 }
 0x1dd   :  { %1594 = vpow2.f32 %v270_v19  ;;  %v269_v21 = vsub.f32 %v259_v16, %v267_v20 }
 0x1df   :  { %v272_v22 = vmul.f32 1.442695, %v269_v21 }
 0x1e1   :  { %1596 = vpow2.f32 %v272_v22 }
 0x1e7   :  { %v1595_v23 = vpop.eup %1594 }
 0x1e8   :  { %1337 = vmatprep.mubr.f32.mxu0 %v1595_v23 }
 0x1eb   :  { %v1597_v24 = vpop.eup %1596 }
 0x1ec   :  { %1338 = vmatmul.mubr.f32.vlgmr.msra.gmra.mrb[2].mxu0 %v1597_v24 }
 0x2bf   :  { %v1339_v26 = vpop.f32.mrb[2].mxu0 }
 0x2c0   :  { %1598 = vlog2.f32 %v1339_v26  ;;  %v340_v27 = vpop.f32.mrb[3].mxu0 }
 0x2c1   :  { %1600 = vlog2.f32 %v340_v27 }
 0x2ca   :  { %v1599_v28 = vpop.eup %1598 }
 0x2cb   :  { %v1601_v29 = vpop.eup %1600  ;;  %v352_v30 = vmul.f32 0.6931472, %v1599_v28 }
 0x2cc   :  { %v350_v31 = vmul.f32 0.6931472, %v1601_v29 }
 0x2cd   :  { %v354_v32 = vadd.f32 %v352_v30, %v267_v20 }
 0x2ce   :  { %v353_v33 = vadd.f32 %v350_v31, %v265_v17 }
 0x2cf   :  { %v356_v34 = vsub.f32 -2.7725885, %v354_v32 }
 0x2d0   :  { %v355_v35 = vsub.f32 -2.7725885, %v353_v33 }
 0x2d1   :  { %366 = vperm.xlu1 %1593, %v356_v34   ;;  %v397_v36 = vand.u32 2147483647, %v356_v34  ;;  %426 = vst.msk [vmem:[#allocation3 + $0x8] sm:$0xff] %vm398_vm2, %v356_v34 }
 0x2d2   :  { %361 = vperm.xlu0 %1592, %v355_v35   ;;  %v396_v37 = vand.u32 2147483647, %v355_v35  ;;  %425 = vst.msk [vmem:[#allocation3] sm:$0xff] %vm398_vm2, %v355_v35 }
 0x2d3   :  { %v400_v38 = vsel %vm398_vm2, %v397_v36, 0.0 }
 0x2d4   :  { %v399_v39 = vsel %vm398_vm2, %v396_v37, 0.0 }
 0x2d5   :  { %v401_v40 = vadd.f32 %v400_v38, %v399_v39 }
 0x2f5   :  { %402 = vadd.xlane.f32.xlu1 %v401_v40 }
 0x350   :  { %v367_v41 = vpop.permute.xlu1 %366 }
 0x351   :  { %v370_v42 = vadd.f32 %v367_v41, %v259_v16  ;;  %v362_v43 = vpop.permute.xlu0 %361 }
 0x352   :  { %v369_v44 = vadd.f32 %v362_v43, %v258_v15 }
 0x354   :  { %v371_v45 = vmax.f32 %v369_v44, %v370_v42 }
 0x356   :  { %v372_v46 = vrot.slane %v371_v45, 4 }
 0x358   :  { %v373_v47 = vmax.f32 %v371_v45, %v372_v46 }
 0x35a   :  { %v374_v48 = vrot.slane %v373_v47, 2 }
 0x35c   :  { %v375_v49 = vmax.f32 %v373_v47, %v374_v48 }
 0x35e   :  { %v376_v50 = vrot.slane %v375_v49, 1 }
 0x360   :  { %v377_v51 = vmax.f32 %v375_v49, %v376_v50 }
 0x362   :  { %v378_v52 = vsub.f32 %v369_v44, %v377_v51  ;;  %v379_v53 = vsub.f32 %v370_v42, %v377_v51 }
 0x364   :  { %v380_v55 = vmul.f32 1.442695, %v378_v52  ;;  %v382_v56 = vmul.f32 1.442695, %v379_v53 }
 0x366   :  { %1602 = vpow2.f32 %v380_v55 }
 0x367   :  { %1604 = vpow2.f32 %v382_v56 }
 0x370   :  { %v1603_v57 = vpop.eup %1602 }
 0x371   :  { %v1605_v58 = vpop.eup %1604 }
 0x372   :  { %v384_v60 = vadd.f32 %v1605_v58, %v1603_v57 }
 0x374   :  { %v385_v61 = vrot.slane %v384_v60, 4 }
 0x376   :  { %v386_v62 = vadd.f32 %v385_v61, %v384_v60 }
 0x378   :  { %v387_v63 = vrot.slane %v386_v62, 2 }
 0x37a   :  { %v388_v2 = vadd.f32 %v387_v63, %v386_v62 }
 0x37c   :  { %v389_v3 = vrot.slane %v388_v2, 1 }
 0x37e   :  { %v390_v4 = vadd.f32 %v389_v3, %v388_v2 }
 0x380   :  { %1606 = vlog2.f32 %v390_v4 }
 0x382   :  { %v403_v5 = vpop.xlane.xlu1 %402 }
 0x383   :  { %v404_v6 = vrot.slane %v403_v5, 4 }
 0x385   :  { %v405_v7 = vadd.f32 %v404_v6, %v403_v5 }
 0x387   :  { %v406_v9 = vrot.slane %v405_v7, 2 }
 0x389   :  { %v407_v10 = vadd.f32 %v406_v9, %v405_v7 }
 0x38a   :  { %v1607_v11 = vpop.eup %1606 }
 0x38b   :  { %v408_v12 = vrot.slane %v407_v10, 1  ;;  %v392_v13 = vmul.f32 0.6931472, %v1607_v11 }
 0x38d   :  { %v409_v14 = vadd.f32 %v408_v12, %v407_v10  ;;  %v393_v15 = vadd.f32 %v392_v13, %v377_v51 }
 0x38f   :  { %1544 = vpush %v409_v14  ;;  %v394_v16 = vsub.f32 -2.7725885, %v393_v15 }
 0x391   :  { %v395_v17 = vsel %vm245_vm1, %v394_v16, 0.0 }
 0x392   :  { %v411_v18 = vand.u32 2147483647, %v395_v17  ;;  %427 = vst [vmem:[#allocation4] sm:$0x1] %v395_v17 }
 0x394   :  { %v413_v19 = vsel %vm412_vm3, %v411_v18, 0.0 }
 0x395   :  { %414 = vadd.xlane.f32.xlu0 %v413_v19 }
 0x3c0   :  { %s1545_s1 = spop %1544 }
 0x422   :  { %v415_v20 = vpop.xlane.xlu0 %414 }
 0x423   :  { %v416_v21 = vrot.slane %v415_v20, 4 }
 0x425   :  { %v417_v22 = vadd.f32 %v416_v21, %v415_v20 }
 0x427   :  { %v418_v23 = vrot.slane %v417_v22, 2 }
 0x429   :  { %v419_v24 = vadd.f32 %v418_v23, %v417_v22 }
 0x42b   :  { %v420_v26 = vrot.slane %v419_v24, 1 }
 0x42d   :  { %v421_v27 = vadd.f32 %v420_v26, %v419_v24 }
 0x42f   :  { %1546 = vpush %v421_v27 }
 0x460   :  { %s1547_s10 = spop %1546 }
 0x461   :  { %s423_s11 = sadd.f32 %s1547_s10, %s1545_s1 }
 0x463   :  { %s424_s12 = smul.f32 0.1, %s423_s11  }
 0x465   :  { %p1119_p2 = scmp.ge.f32.partialorder %s424_s12, 0.1 }
 0x466   :  { %s1855_s13 = smov (%p1119_p2), 1  }
 0x467   :  { %1121 = sbr.rel (!%p1119_p2) target bundleno = 3058 (0xbf2), region = 45 }
 0x46e LB: > { %v1863_v28 = vld [vmem:[#allocation3] sm:$0xff]  ;;  %v1765_v29 = vmov 0   ;;  %v1866_v30 = vld [vmem:[#allocation3 + $0x8] sm:$0xff]  ;;  %v1766_v31 = vmov 1.0|1.0   ;;  %v1887_v33 = vld [vmem:[#allocation2] sm:$0xff]  ;;  %s1753_s13 = sphi %s1855_s13, %s2060_s13   ;;  %s1749_s12 = sphi %s424_s12, %s2062_s12  }
 0x46f   : > { %1608 = vset.pattern.permute.xlu0 %v1765_v29  ;;  %1609 = vset.pattern.permute.xlu1 %v1765_v29  ;;  %v1885_v32 = vld [vmem:[#allocation4] sm:$0x1]  ;;  %v1892_v37 = vld [vmem:[#allocation2 + $0x8] sm:$0xff]  ;;  %p442_p3 = scmp.ge.f32.partialorder %s1749_s12, 0.1  ;;  %p443_p4 = scmp.lt.s32.totalorder %s1753_s13, 100 }
 0x470   : > { %448 = vperm.xlu0 %1608, %v1863_v28   ;;  %1503 = vmatprep.subr.bf16.mxu0 %v1766_v31  ;;  %v462_v34 = vrot.slane %v1885_v32, %v1834_v59  ;;  %v1767_v19 = vmov 0.0|0.0   ;;  %vm1768_vm5 = vmmov 0   ;;  %v1769_v21 = vmov 0.0   ;;  %s701_s16 = sadd.s32 1, %s1753_s13 }
 0x471   : > { %1504 = vmatpush3.bf16.msra.mxu0 %v1766_v31  ;;  %p1897_p5 = pnand %p443_p4, %p442_p3  ;;  %1519 = vmatprep.subr.bf16.mxu1 %v1767_v19  ;;  %vm583_vm6 = vcmask 130048   ;;  %v1770_v29 = vmov 1.0  }
 0x472   : > { %1505 = vmatprep.subr.bf16.mxu0 %v1766_v31  ;;  %1379 = vmatprep.mubr.msk.f32.mxu1 %vm1768_vm5, %v1769_v21 }
 0x473   : > { %s1128_s15 = scalar_select %p1897_p5, 0, 1 }
 0x474   : > { %453 = vperm.xlu0 %1608, %v1866_v30   ;;  %s2056_s13 = smov (!%p1897_p5, %s1753_s13), %s701_s16 }
 0x475   : > { %1506 = vmatpush3.bf16.msra.mxu0 %v1766_v31  ;;  %v1903_v58 = vstv %s1128_s15  ;;  %p707_p6 = scmp.lt.s32.totalorder %s2056_s13, 100  ;;  %s961_s21 = sadd.s32 1, %s2056_s13 }
 0x476   : > { %1507 = vmatprep.subr.bf16.mxu0 %v1766_v31  ;;  %vm693_vm4 = vcmp.eq.s32.totalorder %v1903_v58, 1 }
 0x479   : > { %1508 = vmatpush3.bf16.msra.mxu0 %v1766_v31 }
 0x47a   : > { %1509 = vmatprep.subr.bf16.mxu0 %v1766_v31 }
 0x47d   : > { %1510 = vmatpush3.bf16.msra.mxu0 %v1766_v31 }
 0x47e   : > { %1511 = vmatprep.subr.bf16.mxu0 %v1766_v31 }
 0x481   : > { %1512 = vmatpush3.bf16.msra.mxu0 %v1766_v31 }
 0x482   : > { %1513 = vmatprep.subr.bf16.mxu0 %v1766_v31 }
 0x485   : > { %1514 = vmatpush3.bf16.msra.mxu0 %v1766_v31 }
 0x486   : > { %1515 = vmatprep.subr.bf16.mxu0 %v1766_v31 }
 0x489   : > { %1516 = vmatpush3.bf16.msra.mxu0 %v1766_v31 }
 0x48a   : > { %1517 = vmatprep.subr.bf16.mxu0 %v1766_v31 }
 0x48d   : > { %1518 = vmatpush3.bf16.msra.mxu0 %v1766_v31 }
 0x48e   : > { %1538 = vmatprep.subr.bf16.mxu0 %v1767_v19 }
 0x4ef   : > { %v449_v35 = vpop.permute.xlu0 %448 }
 0x4f0   : > { %v456_v36 = vadd.f32 %v449_v35, %v1887_v33 }
 0x4f2   : > { %v464_v38 = vadd.f32 %v462_v34, %v456_v36 }
 0x4f3   : > { %v454_v39 = vpop.permute.xlu0 %453 }
 0x4f4   : > { %v457_v40 = vadd.f32 %v454_v39, %v1892_v37  ;;  %466 = vmax.xlane.f32.xlu1 %v464_v38 }
 0x4f6   : > { %v465_v41 = vadd.f32 %v462_v34, %v457_v40 }
 0x4f8   : > { %468 = vmax.xlane.f32.xlu1 %v465_v41 }
 0x581   : > { %v467_v42 = vpop.xlane.xlu1 %466 }
 0x582   : > { %v470_v43 = vsub.f32 %v464_v38, %v467_v42 }
 0x584   : > { %v472_v44 = vmul.f32 1.442695, %v470_v43 }
 0x585   : > { %v469_v45 = vpop.xlane.xlu1 %468 }
 0x586   : > { %1610 = vpow2.f32 %v472_v44  ;;  %v471_v46 = vsub.f32 %v465_v41, %v469_v45 }
 0x588   : > { %v474_v47 = vmul.f32 1.442695, %v471_v46 }
 0x58a   : > { %1612 = vpow2.f32 %v474_v47 }
 0x590   : > { %v1611_v48 = vpop.eup %1610 }
 0x591   : > { %1372 = vmatprep.mubr.f32.mxu0 %v1611_v48 }
 0x594   : > { %v1613_v49 = vpop.eup %1612 }
 0x595   : > { %1373 = vmatmul.mubr.f32.vlgmr.msra.gmra.mrb[0].mxu0 %v1613_v49 }
 0x596   : > { %1421 = vmatprep.mubr.msk.f32.mxu0 %vm1768_vm5, %v1769_v21 }
 0x668   : > { %v1374_v50 = vpop.f32.mrb[0].mxu0 }
 0x669   : > { %1614 = vlog2.f32 %v1374_v50  ;;  %v542_v51 = vpop.f32.mrb[1].mxu0 }
 0x66a   : > { %1616 = vlog2.f32 %v542_v51 }
 0x673   : > { %v1615_v52 = vpop.eup %1614 }
 0x674   : > { %v1617_v53 = vpop.eup %1616  ;;  %v554_v55 = vmul.f32 0.6931472, %v1615_v52 }
 0x675   : > { %v552_v56 = vmul.f32 0.6931472, %v1617_v53 }
 0x676   : > { %v556_v57 = vadd.f32 %v554_v55, %v469_v45 }
 0x677   : > { %v555_v60 = vadd.f32 %v552_v56, %v467_v42 }
 0x678   : > { %v558_v61 = vsub.f32 -2.7725885, %v556_v57 }
 0x679   : > { %v557_v62 = vsub.f32 -2.7725885, %v555_v60 }
 0x67a   : > { %v560_v63 = vadd.f32 %v558_v61, %v1866_v30 }
 0x67b   : > { %v559_v2 = vadd.f32 %v557_v62, %v1863_v28 }
 0x67c   : > { %v564_v3 = vsub.f32 %v560_v63, %v1866_v30  ;;  %v695_v4 = vsel %vm693_vm4, %v560_v63, %v1866_v30 }
 0x67d   : > { %697 = vst.msk [vmem:[#allocation3 + $0x8] sm:$0xff] %vm398_vm2, %v695_v4  ;;  %v563_v5 = vsub.f32 %v559_v2, %v1863_v28  ;;  %v694_v6 = vsel %vm693_vm4, %v559_v2, %v1863_v28 }
 0x67e   : > { %v566_v7 = vadd.f32 %v564_v3, %v469_v45  ;;  %696 = vst.msk [vmem:[#allocation3] sm:$0xff] %vm398_vm2, %v694_v6  ;;  %v664_v9 = vand.u32 2147483647, %v564_v3 }
 0x67f   : > { %v565_v10 = vadd.f32 %v563_v5, %v467_v42  ;;  %v663_v11 = vand.u32 2147483647, %v563_v5 }
 0x680   : > { %v569_v12 = vmul.f32 1.442695, %v566_v7  ;;  %v666_v13 = vsel %vm398_vm2, %v664_v9, 0.0 }
 0x681   : > { %v567_v14 = vmul.f32 1.442695, %v565_v10  ;;  %v665_v15 = vsel %vm398_vm2, %v663_v11, 0.0 }
 0x682   : > { %1618 = vpow2.f32 %v569_v12  ;;  %v1920_v16 = vadd.f32 %v666_v13, %v665_v15 }
 0x683   : > { %1620 = vpow2.f32 %v567_v14 }
 0x684   : > { %v1925_v22 = vld [vmem:[#allocation3 + $0x8] sm:$0xff] }
 0x685   : > { %v1922_v20 = vld [vmem:[#allocation3] sm:$0xff] }
 0x68c   : > { %v1619_v17 = vpop.eup %1618 }
 0x68d   : > { %v1621_v18 = vpop.eup %1620  ;;  %578 = vperm.xlu1 %1609, %v1619_v17  }
 0x68e   : > { %573 = vperm.xlu0 %1608, %v1621_v18  }
 0x692   : > { %712 = vperm.xlu0 %1608, %v1922_v20  }
 0x696   : > { %717 = vperm.xlu0 %1608, %v1925_v22  }
 0x70c   : > { %v579_v23 = vpop.permute.xlu1 %578 }
 0x70d   : > { %v582_v24 = vmul.f32 %v1613_v49, %v579_v23  ;;  %v574_v26 = vpop.permute.xlu0 %573 }
 0x70e   : > { %v581_v27 = vmul.f32 %v1611_v48, %v574_v26 }
 0x710   : > { %v1520_v28 = vpack.c.bf16 %v582_v24, %v581_v27 }
 0x711   : > { %v713_v42 = vpop.permute.xlu0 %712 }
 0x712   : > { %1521 = vmatpush3.bf16.msra.mxu1 %v1520_v28  ;;  %v720_v45 = vadd.f32 %v713_v42, %v1887_v33 }
 0x713   : > { %1522 = vmatprep.subr.bf16.mxu1 %v1766_v31 }
 0x715   : > { %1380 = vmatmul.mubr.msk.f32.vlgmr.msra.gmra.mrb[0].mxu1 %vm583_vm6, %v1770_v29  ;;  %v718_v44 = vpop.permute.xlu0 %717 }
 0x716   : > { %1523 = vmatpush3.bf16.msra.mxu1 %v1766_v31  ;;  %v721_v46 = vadd.f32 %v718_v44, %v1892_v37 }
 0x717   : > { %1524 = vmatprep.subr.bf16.mxu1 %v1766_v31 }
 0x71a   : > { %1525 = vmatpush3.bf16.msra.mxu1 %v1766_v31 }
 0x71b   : > { %1526 = vmatprep.subr.bf16.mxu1 %v1766_v31 }
 0x71e   : > { %1527 = vmatpush3.bf16.msra.mxu1 %v1766_v31 }
 0x71f   : > { %1528 = vmatprep.subr.bf16.mxu1 %v1766_v31 }
 0x722   : > { %1529 = vmatpush3.bf16.msra.mxu1 %v1766_v31 }
 0x723   : > { %1530 = vmatprep.subr.bf16.mxu1 %v1766_v31 }
 0x726   : > { %1531 = vmatpush3.bf16.msra.mxu1 %v1766_v31 }
 0x727   : > { %1532 = vmatprep.subr.bf16.mxu1 %v1766_v31 }
 0x72a   : > { %1533 = vmatpush3.bf16.msra.mxu1 %v1766_v31 }
 0x72b   : > { %1534 = vmatprep.subr.bf16.mxu1 %v1766_v31 }
 0x72e   : > { %1535 = vmatpush3.bf16.msra.mxu1 %v1766_v31 }
 0x72f   : > { %1536 = vmatprep.subr.bf16.mxu1 %v1766_v31 }
 0x732   : > { %1537 = vmatpush3.bf16.msra.mxu1 %v1766_v31 }
 0x7e8   : > { %v653_v30 = vpop.f32.mrb[0].mxu1 }
 0x7e9   : > { %v657_v34 = vmax.f32 %v653_v30, 1e-37  ;;  %v1381_v35 = vpop.f32.mrb[1].mxu1 }
 0x7eb   : > { %1622 = vlog2.f32 %v657_v34 }
 0x7f5   : > { %v1623_v36 = vpop.eup %1622 }
 0x7f6   : > { %v659_v38 = vmul.f32 0.6931472, %v1623_v36 }
 0x7f8   : > { %v660_v39 = vsub.f32 -2.7725885, %v659_v38 }
 0x7fa   : > { %v661_v40 = vadd.f32 %v660_v39, %v1885_v32 }
 0x7fc   : > { %v662_v41 = vsel %vm245_vm1, %v661_v40, 0.0 }
 0x7fd   : > { %v698_v43 = vsel %vm693_vm4, %v662_v41, %v1885_v32  ;;  %v677_v18 = vsub.f32 %v662_v41, %v1885_v32 }
 0x7fe   : > { %699 = vst [vmem:[#allocation4] sm:$0x1] %v698_v43 }
 0x7ff   : > { %v678_v23 = vand.u32 2147483647, %v677_v18 }
 0x801   : > { %v679_v28 = vsel %vm412_vm3, %v678_v23, 0.0 }
 0x805   : > { %v1952_v31 = vld [vmem:[#allocation4] sm:$0x1] }
 0x806   : > { %v726_v47 = vrot.slane %v1952_v31, %v1834_v59 }
 0x808   : > { %v728_v48 = vadd.f32 %v726_v47, %v720_v45  ;;  %v729_v49 = vadd.f32 %v726_v47, %v721_v46 }
 0x80a   : > { %730 = vmax.xlane.f32.xlu0 %v728_v48  ;;  %732 = vmax.xlane.f32.xlu1 %v729_v49 }
 0x897   : > { %v733_v50 = vpop.xlane.xlu1 %732  ;;  %v731_v51 = vpop.xlane.xlu0 %730 }
 0x898   : > { %v735_v52 = vsub.f32 %v729_v49, %v733_v50  ;;  %v734_v53 = vsub.f32 %v728_v48, %v731_v51 }
 0x89a   : > { %v738_v55 = vmul.f32 1.442695, %v735_v52  ;;  %v736_v56 = vmul.f32 1.442695, %v734_v53 }
 0x89c   : > { %1624 = vpow2.f32 %v738_v55 }
 0x89d   : > { %1626 = vpow2.f32 %v736_v56 }
 0x8a6   : > { %v1625_v57 = vpop.eup %1624 }
 0x8a7   : > { %v1627_v58 = vpop.eup %1626 }
 0x8a8   : > { %1414 = vmatprep.mubr.f32.mxu1 %v1627_v58 }
 0x8a9   : > { %1415 = vmatmul.mubr.f32.vlgmr.msra.gmra.mrb[2].mxu1 %v1625_v57 }
 0x97c   : > { %v1416_v33 = vpop.f32.mrb[2].mxu1 }
 0x97d   : > { %1628 = vlog2.f32 %v1416_v33  ;;  %v806_v37 = vpop.f32.mrb[3].mxu1 }
 0x97e   : > { %1630 = vlog2.f32 %v806_v37 }
 0x987   : > { %v1629_v60 = vpop.eup %1628 }
 0x988   : > { %v1631_v61 = vpop.eup %1630  ;;  %v818_v62 = vmul.f32 0.6931472, %v1629_v60 }
 0x989   : > { %v816_v63 = vmul.f32 0.6931472, %v1631_v61 }
 0x98a   : > { %v820_v2 = vadd.f32 %v818_v62, %v733_v50 }
 0x98b   : > { %v819_v3 = vadd.f32 %v816_v63, %v731_v51 }
 0x98c   : > { %v822_v4 = vsub.f32 -2.7725885, %v820_v2 }
 0x98d   : > { %v821_v5 = vsub.f32 -2.7725885, %v819_v3 }
 0x98e   : > { %v1959_v6 = vadd.f32 %v822_v4, %v1925_v22 }
 0x98f   : > { %v1962_v7 = vadd.f32 %v821_v5, %v1922_v20 }
 0x990   : > { %v828_v9 = vsub.f32 %v1959_v6, %v1925_v22 }
 0x991   : > { %v827_v10 = vsub.f32 %v1962_v7, %v1922_v20 }
 0x992   : > { %v830_v11 = vadd.f32 %v828_v9, %v733_v50  ;;  %v924_v21 = vand.u32 2147483647, %v828_v9 }
 0x993   : > { %v829_v12 = vadd.f32 %v827_v10, %v731_v51  ;;  %v923_v19 = vand.u32 2147483647, %v827_v10 }
 0x994   : > { %v833_v13 = vmul.f32 1.442695, %v830_v11  ;;  %v926_v26 = vsel %vm398_vm2, %v924_v21, 0.0 }
 0x995   : > { %v831_v14 = vmul.f32 1.442695, %v829_v12  ;;  %v925_v24 = vsel %vm398_vm2, %v923_v19, 0.0 }
 0x996   : > { %1632 = vpow2.f32 %v833_v13  ;;  %v927_v27 = vadd.f32 %v926_v26, %v925_v24 }
 0x997   : > { %1634 = vpow2.f32 %v831_v14 }
 0x9a0   : > { %v1633_v15 = vpop.eup %1632 }
 0x9a1   : > { %v1635_v17 = vpop.eup %1634  ;;  %842 = vperm.xlu1 %1609, %v1633_v15  }
 0x9a2   : > { %837 = vperm.xlu0 %1608, %v1635_v17  }
 0x9c1   : > { %668 = vadd.xlane.f32.xlu0 %v1920_v16 }
 0x9c5   : > { %680 = vadd.xlane.f32.xlu1 %v679_v28  ;;  %928 = vadd.xlane.f32.xlu0 %v927_v27 }
 0xa20   : > { %v843_v30 = vpop.permute.xlu1 %842 }
 0xa21   : > { %v846_v34 = vmul.f32 %v1625_v57, %v843_v30  ;;  %v838_v35 = vpop.permute.xlu0 %837 }
 0xa22   : > { %v845_v36 = vmul.f32 %v1627_v58, %v838_v35 }
 0xa24   : > { %v1539_v38 = vpack.c.bf16 %v846_v34, %v845_v36 }
 0xa26   : > { %1540 = vmatpush3.bf16.msra.mxu0 %v1539_v38 }
 0xa29   : > { %1422 = vmatmul.mubr.msk.f32.vlgmr.msra.gmra.mrb[2].mxu0 %vm583_vm6, %v1770_v29 }
 0xa4e   : > { %v669_v32 = vpop.xlane.xlu0 %668 }
 0xa4f   : > { %v670_v39 = vrot.slane %v669_v32, 4 }
 0xa51   : > { %v671_v40 = vadd.f32 %v670_v39, %v669_v32 }
 0xa52   : > { %v681_v41 = vpop.xlane.xlu1 %680  ;;  %v929_v42 = vpop.xlane.xlu0 %928 }
 0xa53   : > { %v672_v16 = vrot.slane %v671_v40, 2  ;;  %v682_v43 = vrot.slane %v681_v41, 4  ;;  %v930_v44 = vrot.slane %v929_v42, 4 }
 0xa55   : > { %v683_v45 = vadd.f32 %v682_v43, %v681_v41  ;;  %v931_v46 = vadd.f32 %v930_v44, %v929_v42  ;;  %v673_v47 = vadd.f32 %v672_v16, %v671_v40 }
 0xa57   : > { %v684_v48 = vrot.slane %v683_v45, 2  ;;  %v932_v49 = vrot.slane %v931_v46, 2  ;;  %v674_v50 = vrot.slane %v673_v47, 1 }
 0xa59   : > { %v685_v51 = vadd.f32 %v684_v48, %v683_v45  ;;  %v675_v52 = vadd.f32 %v674_v50, %v673_v47  ;;  %v933_v29 = vadd.f32 %v932_v49, %v931_v46 }
 0xa5b   : > { %1548 = vpush %v675_v52  ;;  %v686_v53 = vrot.slane %v685_v51, 1  ;;  %v934_v55 = vrot.slane %v933_v29, 1 }
 0xa5d   : > { %v687_v56 = vadd.f32 %v686_v53, %v685_v51  ;;  %v935_v57 = vadd.f32 %v934_v55, %v933_v29 }
 0xa5f   : > { %1550 = vpush %v687_v56 }
 0xa60   : > { %1552 = vpush %v935_v57 }
 0xa8c   : > { %s1549_s17 = spop %1548 }
 0xa90   : > { %s1551_s18 = spop %1550 }
 0xa91   : > { %s689_s19 = sadd.f32 %s1551_s18, %s1549_s17  ;;  %s1553_s26 = spop %1552 }
 0xa93   : > { %s690_s20 = smul.f32 0.1, %s689_s19 }
 0xa95   : > { %s2058_s12 = smov (!%p1897_p5, %s1749_s12), %s690_s20 }
 0xa96   : > { %p706_p7 = scmp.ge.f32.partialorder %s2058_s12, 0.1 }
 0xa98   : > { %p1985_p8 = pnand %p707_p6, %p706_p7 }
 0xa9a   : > { %s2060_s13 = smov (!%p1985_p8, %s2056_s13), %s961_s21 }
 0xa9b   : > { %s1132_s25 = scalar_select %p1985_p8, 0, 1 }
 0xa9c   : > { %p431_p9 = scmp.lt.s32.totalorder %s2060_s13, 100 }
 0xa9d   : > { %v952_v58 = vstv %s1132_s25 }
 0xa9e   : > { %vm953_vm7 = vcmp.eq.s32.totalorder %v952_v58, 1 }
 0xa9f   : > { %v954_v33 = vsel %vm953_vm7, %v1962_v7, %v1922_v20  ;;  %v955_v37 = vsel %vm953_vm7, %v1959_v6, %v1925_v22 }
 0xaa0   : > { %956 = vst.msk [vmem:[#allocation3] sm:$0xff] %vm398_vm2, %v954_v33  ;;  %957 = vst.msk [vmem:[#allocation3 + $0x8] sm:$0xff] %vm398_vm2, %v955_v37 }
 0xafc   : > { %v913_v60 = vpop.f32.mrb[2].mxu0 }
 0xafd   : > { %v917_v61 = vmax.f32 %v913_v60, 1e-37  ;;  %v1423_v62 = vpop.f32.mrb[3].mxu0 }
 0xaff   : > { %1636 = vlog2.f32 %v917_v61 }
 0xb09   : > { %v1637_v63 = vpop.eup %1636 }
 0xb0a   : > { %v919_v2 = vmul.f32 0.6931472, %v1637_v63 }
 0xb0c   : > { %v920_v3 = vsub.f32 -2.7725885, %v919_v2 }
 0xb0e   : > { %v921_v4 = vadd.f32 %v920_v3, %v1952_v31 }
 0xb10   : > { %v922_v5 = vsel %vm245_vm1, %v921_v4, 0.0 }
 0xb11   : > { %v937_v20 = vsub.f32 %v922_v5, %v1952_v31  ;;  %v958_v22 = vsel %vm953_vm7, %v922_v5, %v1952_v31 }
 0xb12   : > { %959 = vst [vmem:[#allocation4] sm:$0x1] %v958_v22 }
 0xb13   : > { %v938_v6 = vand.u32 2147483647, %v937_v20 }
 0xb15   : > { %v939_v7 = vsel %vm412_vm3, %v938_v6, 0.0 }
 0xb16   : > { %940 = vadd.xlane.f32.xlu0 %v939_v7 }
 0xba3   : > { %v941_v9 = vpop.xlane.xlu0 %940 }
 0xba4   : > { %v942_v10 = vrot.slane %v941_v9, 4 }
 0xba6   : > { %v943_v11 = vadd.f32 %v942_v10, %v941_v9 }
 0xba8   : > { %v944_v12 = vrot.slane %v943_v11, 2 }
 0xbaa   : > { %v945_v13 = vadd.f32 %v944_v12, %v943_v11 }
 0xbac   : > { %v946_v14 = vrot.slane %v945_v13, 1 }
 0xbae   : > { %v947_v15 = vadd.f32 %v946_v14, %v945_v13 }
 0xbb0   : > { %1554 = vpush %v947_v15 }
 0xbe1   : > { %s1555_s27 = spop %1554 }
 0xbe2   : > { %s949_s28 = sadd.f32 %s1555_s27, %s1553_s26 }
 0xbe4   : > { %s950_s29 = smul.f32 0.1, %s949_s28 }
 0xbe6   : > { %s2062_s12 = smov (!%p1985_p8, %s2058_s12), %s950_s29 }
 0xbe7   : > { %p432_p10 = scmp.ge.f32.partialorder %s2062_s12, 0.1 }
 0xbe9   : > { %p433_p11 = pnand %p432_p10, %p431_p9 }
 0xbeb   :  { %436 = sbr.rel (!%p433_p11) target bundleno = 1134 (0x46e), region = 51 }
 0xbf2 PF:  { %1638 = vset.pattern.permute.xlu0 %v1764_v25  ;;  %v963_v31 = vld [vmem:[#allocation3] sm:$0xff]  ;;  %1541 = vmatprep.subr.bf16.mxu0 %v1759_v0  ;;  %v964_v17 = vld [vmem:[#allocation3 + $0x8] sm:$0xff]  ;;  %v966_v18 = vld [vmem:[#allocation2] sm:$0xff]  ;;  %vm996_vm8 = vcmask 130048   ;;  %s1771_s30 = smov [#allocation11]  }
 0xbf3   :  { %970 = vperm.xlu0 %1638, %v963_v31   ;;  %1428 = vmatprep.mubr.msk.f32.mxu0 %vm1760_vm0, %v1761_v1  ;;  %v1135_v19 = vld [vmem:[#allocation4] ss:$0 sm:$0xff]  ;;  %v967_v24 = vld [vmem:[#allocation2 + $0x8] sm:$0xff]  ;;  %s1099_s4 = sshll.u32 %s1771_s30, 4  ;;  %s1100_s4 = int_to_ptr.vmem [resolvable:$true] %s1099_s4 }
 0xbf4   :  { %s1687_s5 = scalar_lea.vmem %s1100_s4, 256  ;;  %p1692_p13 = scmp.lt.s32.totalorder %s1100_s4, %s1100_s4 }
 0xbf5   :  { %p1688_p12 = scmp.ne.s32.totalorder %s1100_s4, %s1687_s5  ;;  %p1693_p0 = scmp.lt.s32.totalorder %s1687_s5, %s1687_s5 }
 0xbf7   :  { %975 = vperm.xlu0 %1638, %v964_v17   ;;  %p1694_p1 = por %p1693_p0, %p1692_p13 }
 0xbf9   :  { %p1695_p2 = pnand %p1694_p1, %p1688_p12 }
 0xc72   :  { %v971_v21 = vpop.permute.xlu0 %970 }
 0xc73   :  { %v978_v23 = vadd.f32 %v971_v21, %v966_v18 }
 0xc75   :  { %v986_v26 = vadd.f32 %v1135_v19, %v978_v23 }
 0xc76   :  { %v976_v27 = vpop.permute.xlu0 %975 }
 0xc77   :  { %v988_v28 = vmul.f32 1.442695, %v986_v26  ;;  %v979_v59 = vadd.f32 %v976_v27, %v967_v24 }
 0xc79   :  { %1639 = vpow2.f32 %v988_v28  ;;  %v987_v8 = vadd.f32 %v1135_v19, %v979_v59 }
 0xc7b   :  { %v990_v25 = vmul.f32 1.442695, %v987_v8 }
 0xc7d   :  { %1641 = vpow2.f32 %v990_v25 }
 0xc83   :  { %v1640_v0 = vpop.eup %1639 }
 0xc84   :  { %992 = vst [vmem:[#allocation11] sm:$0xff] %v1640_v0  ;;  %v994_v34 = vmul.f32 %v1640_v0, %v966_v18 }
 0xc87   :  { %v1642_v30 = vpop.eup %1641 }
 0xc88   :  { %v995_v1 = vmul.f32 %v1642_v30, %v967_v24  ;;  %993 = vst [vmem:[#allocation11 + $0x8] sm:$0xff] %v1642_v30 }
 0xc8a   :  { %v1542_v35 = vpack.c.bf16 %v995_v1, %v994_v34 }
 0xc8c   :  { %1543 = vmatpush3.bf16.msra.mxu0 %v1542_v35 }
 0xc8f   :  { %1429 = vmatmul.mubr.msk.f32.vlgmr.msra.gmra.mrb[0].mxu0 %vm996_vm8, %v1762_v54 }
 0xd62   :  { %v1066_v36 = vpop.f32.mrb[0].mxu0 }
 0xd63   :  { %v1430_v38 = vpop.f32.mrb[1].mxu0  ;;  %v1070_v32 = vsel %vm412_vm3, %v1066_v36, 0.0 }
 0xd64   :  { %1071 = vadd.xlane.f32.xlu1 %v1070_v32 }
 0xd65   :  { %1698 = shalt.err (!%p1695_p2)
}
 0xd66   :  { %s1699_s8 = scalar_lea.hbm %s2052_s3, 256 }
 0xd67   :  { %p1700_p3 = scmp.ne.s32.totalorder %s2052_s3, %s1699_s8  ;;  %p1703_p4 = scmp.lt.u32.totalorder %s1699_s8, %s2052_s3 }
 0xd69   :  { %p1705_p5 = pnand %p1703_p4, %p1700_p3 }
 0xd6b   :  { %1708 = shalt.err (!%p1705_p5)
}
 0xd6c   :  { %1105 = dma.vmem_to_hbm [thread:$0]  %s1100_s4, 256, %s2052_s3, [#allocation12], %s1756_s22, %s1756_s22, %s1757_s23   ;;  %vm1082_vm9 = vcmask 0  }
 0xd6d   :  { %s1772_s13 = smov [#allocation10]  }
 0xd6e   :  { %s1090_s14 = sshll.u32 %s1772_s13, 4  ;;  %s1091_s14 = int_to_ptr.vmem [resolvable:$true] %s1090_s14 }
 0xd6f   :  { %s1709_s17 = scalar_lea.vmem %s1091_s14, 16  ;;  %s1713_s18 = scalar_lea.vmem %s1091_s14, 32 }
 0xd70   :  { %p1710_p6 = scmp.ne.s32.totalorder %s1091_s14, %s1709_s17  ;;  %p1714_p7 = scmp.lt.s32.totalorder %s1091_s14, %s1091_s14 }
 0xd71   :  { %p1715_p8 = scmp.lt.s32.totalorder %s1713_s18, %s1709_s17 }
 0xd73   :  { %p1716_p9 = por %p1715_p8, %p1714_p7 }
 0xd75   :  { %p1717_p10 = pnand %p1716_p9, %p1710_p6 }
 0xdf1   :  { %v1072_v54 = vpop.xlane.xlu1 %1071 }
 0xdf2   :  { %v1073_v39 = vrot.slane %v1072_v54, 4 }
 0xdf4   :  { %v1074_v40 = vadd.f32 %v1073_v39, %v1072_v54 }
 0xdf6   :  { %v1075_v41 = vrot.slane %v1074_v40, 2 }
 0xdf8   :  { %v1076_v42 = vadd.f32 %v1075_v41, %v1074_v40 }
 0xdfa   :  { %v1077_v16 = vrot.slane %v1076_v42, 1 }
 0xdfc   :  { %v1078_v43 = vadd.f32 %v1077_v16, %v1076_v42 }
 0xdfe   :  { %1556 = vpush %v1078_v43 }
 0xe2f   :  { %s1557_s15 = spop %1556 }
 0xe30   :  { %s1080_s16 = smul.f32 -0.1, %s1557_s15 }
 0xe32   :  { %v1081_v44 = vstv %s1080_s16 }
 0xe33   :  { %1083 = vst.msk [vmem:[#allocation10] sm:$0x1] %vm1082_vm9, %v1081_v44 }
 0xe34   :  { %1720 = shalt.err (!%p1717_p10)
}
 0xe35   :  { %s1721_s23 = scalar_lea.hbm %s2051_s2, 16 }
 0xe36   :  { %p1722_p11 = scmp.ne.s32.totalorder %s2051_s2, %s1721_s23  ;;  %p1725_p12 = scmp.lt.u32.totalorder %s1721_s23, %s2051_s2 }
 0xe38   :  { %p1727_p13 = pnand %p1725_p12, %p1722_p11 }
 0xe3a   :  { %1730 = shalt.err (!%p1727_p13)
}
 0xe3b   :  { %1093 = dma.vmem_to_hbm [thread:$0]  %s1091_s14, 16, %s2051_s2, [#allocation7]  }
 0xe3c   :  { %1743 = dma.done.wait [#allocation7], 16  }
 0xe3d   :  { %1744 = vsyncadd [#allocation7], 4294967280 }
 0xe3e   :  { %1745 = dma.done.wait [#allocation12], 256  }
 0xe3f   :  { %1746 = vsyncadd [#allocation12], 4294967040 }
 0xe40   :  { %1112 = vsyncpa [#allocation6], 1 }
 0xe41   :  { %1113 = vsyncpa [#allocation9], 1 }
 0xe42   :  { %1114 = vsyncpa [#allocation7], 1 }
 0xe43   :  { %1115 = vsyncpa [#allocation12], 1 }

</bundles_post_ra>
